<compile_context>
chip_gen: v5e
topology: v5e:2x2
jax: 0.10.0
libtpu: 0.0.40
codegen_flags: <defaults>
</compile_context>

<pallas_src>
import functools

import numpy as np
import jax
import jax.numpy as jnp
from jax.experimental import pallas as pl

# ----------------------------- config (small, synthetic) ---------------------
HIDDEN_SIZE = 128
NUM_HEADS = 2
HEAD_DIM = HIDDEN_SIZE // NUM_HEADS             # 64
INTERMEDIATE_SIZE_CFG = 512                     # config.intermediate_size
MLP_INTERMEDIATE = INTERMEDIATE_SIZE_CFG // 2   # QWenMLP gets intermediate_size // 2
SEQ_LEN = 16
EPS = 1e-6
ROPE_THETA = 10000.0


# ----------------------------- fused block kernel -----------------------------
def _qwen_block_kernel(eps, scale, num_heads, head_dim, inter, has_residual,
                       *refs):
    if has_residual:
        (x_ref, res_ref, pos_ref, w_big_ref, w_down_ref, vec_ref,
         out_ref, res_out_ref) = refs
    else:
        (x_ref, pos_ref, w_big_ref, w_down_ref, vec_ref,
         out_ref, res_out_ref) = refs
        res_ref = None

    f32 = jnp.float32
    bf16 = jnp.bfloat16
    hd = num_heads * head_dim            # == hidden size (128)
    half = head_dim // 2
    t = x_ref.shape[0]

    # ---- packed small-vector slab (all slices 128-lane aligned) ----
    ln1 = vec_ref[:, 0:hd]                        # (1, hd)
    ln2 = vec_ref[:, hd:2 * hd]                   # (1, hd)
    bqkv = vec_ref[:, 2 * hd:5 * hd]              # (1, 3*hd)
    inv_freq = vec_ref[:, 5 * hd:6 * hd]          # (1, hd)  sign pre-folded

    # ---- ln_1: RMSNorm (fused with residual add when present), f32 ----
    z = x_ref[...] + res_ref[...] if has_residual else x_ref[...]
    var = jnp.mean(z * z, axis=-1, keepdims=True)
    h1 = z * jax.lax.rsqrt(var + eps) * ln1

    # ---- QKV projection + bias: bf16 operands, f32 accumulation (MXU) ----
    qkv = (jnp.dot(h1.astype(bf16), w_big_ref[:, 0:3 * hd],
                   preferred_element_type=f32) + bqkv)
    q = qkv[:, :hd]
    k = qkv[:, hd:2 * hd]
    v = qkv[:, 2 * hd:3 * hd]

    # ---- RoPE built in-kernel. inv_freq lanes are [-f..| +f..] per head so
    #      cos(pos*inv) is the plain cos table and sin(pos*inv) carries the
    #      rotate-half sign. Rotate-half = per-head swap of the two 32-lane
    #      halves via static-slice concatenation (lane op, VPU/XLU slack). ----
    freqs = pos_ref[...] * inv_freq               # (t,1)*(1,hd) -> (t,hd)
    cos = jnp.cos(freqs)
    sin = jnp.sin(freqs)

    def rotate_half(x):
        parts = []
        for h in range(num_heads):
            x1 = x[:, h * head_dim: h * head_dim + half]
            x2 = x[:, h * head_dim + half: (h + 1) * head_dim]
            parts.extend([x2, x1])
        return jnp.concatenate(parts, axis=-1)

    q_r = ((q * cos + rotate_half(q) * sin) * scale).astype(bf16)  # scale folded
    k_r = (k * cos + rotate_half(k) * sin).astype(bf16)
    v_b = v.astype(bf16)

    row = jax.lax.broadcasted_iota(jnp.int32, (t, t), 0)
    col = jax.lax.broadcasted_iota(jnp.int32, (t, t), 1)
    causal = col <= row

    # contract last dims: q @ k^T without a transpose op
    dn = (((1,), (1,)), ((), ()))
    o_heads = []
    for h in range(num_heads):            # tiny static head count -> unrolled
        sl = slice(h * head_dim, (h + 1) * head_dim)
        s = jax.lax.dot_general(q_r[:, sl], k_r[:, sl], dn,
                                preferred_element_type=f32)
        s = jnp.where(causal, s, -jnp.inf)      # diag always unmasked -> NaN-safe
        m = jnp.max(s, axis=-1, keepdims=True)
        p = jnp.exp(s - m)
        l = jnp.sum(p, axis=-1, keepdims=True)
        p = (p / l).astype(bf16)
        o_heads.append(jnp.dot(p, v_b[:, sl],
                               preferred_element_type=f32).astype(bf16))

    # one lane-dense (t, hidden) slab -> ONE out-projection matmul
    o_slab = jnp.concatenate(o_heads, axis=-1)                    # (t, hd) bf16
    attn = jnp.dot(o_slab, w_big_ref[:, 3 * hd:4 * hd],
                   preferred_element_type=f32)

    # ---- ln_2: RMSNorm fused with residual add; new residual = attn + z ----
    z2 = attn + z
    res_out_ref[...] = z2
    var2 = jnp.mean(z2 * z2, axis=-1, keepdims=True)
    h2 = z2 * jax.lax.rsqrt(var2 + eps) * ln2

    # ---- MLP: gate_up matmul -> SiLU*mul -> down matmul ----
    gu = jnp.dot(h2.astype(bf16), w_big_ref[:, 4 * hd:4 * hd + 2 * inter],
                 preferred_element_type=f32)
    g = gu[:, :inter]
    u = gu[:, inter:]
    act = (g * jax.nn.sigmoid(g) * u).astype(bf16)
    out_ref[...] = jnp.dot(act, w_down_ref[...], preferred_element_type=f32)


# ----------------------------- wrapper / weight prep ---------------------------
def prepare_params(params):
    """One-time weight prep: coalesce the hidden-major matmul weights into a
    single (hidden, 1024) bf16 slab, and pack ln_1/ln_2/c_attn bias plus the
    pre-signed RoPE inv_freq lane table into one (1, 768) f32 slab."""
    w_big = jnp.concatenate(
        [params["c_attn_w"].astype(jnp.bfloat16),        # (128, 384)
         params["c_proj_w"].astype(jnp.bfloat16),        # (128, 128)
         params["gate_up_w"].astype(jnp.bfloat16)],      # (128, 512)
        axis=1)                                          # (128, 1024)

    inv = 1.0 / (ROPE_THETA ** (np.arange(0, HEAD_DIM, 2, dtype=np.float32)
                                / HEAD_DIM))             # (head_dim/2,)
    # per head: [-inv (x1 lanes) | +inv (x2 lanes)]; cos is even so unaffected.
    inv_slab = np.tile(np.concatenate([-inv, inv]), NUM_HEADS)      # (hd,)

    vec = jnp.concatenate(
        [params["ln_1_w"].astype(jnp.float32),
         params["ln_2_w"].astype(jnp.float32),
         params["c_attn_b"].astype(jnp.float32),
         jnp.asarray(inv_slab, jnp.float32)]).reshape(1, -1)        # (1, 768)

    return {"w_big": w_big,
            "w_down": params["mlp_c_proj_w"].astype(jnp.bfloat16),
            "vec": vec}


def qwen_block_forward(prep, positions, hidden_states, residual=None):
    t, hsz = hidden_states.shape
    pos_col = positions.astype(jnp.float32).reshape(t, 1)
    has_res = residual is not None
    kernel = functools.partial(_qwen_block_kernel, EPS, HEAD_DIM ** -0.5,
                               NUM_HEADS, HEAD_DIM, MLP_INTERMEDIATE, has_res)
    args = (hidden_states,)
    if has_res:
        args = args + (residual,)
    args = args + (pos_col, prep["w_big"], prep["w_down"], prep["vec"])
    out, new_residual = pl.pallas_call(
        kernel,
        out_shape=(jax.ShapeDtypeStruct((t, hsz), jnp.float32),
                   jax.ShapeDtypeStruct((t, hsz), jnp.float32)),
    )(*args)
    return out, new_residual


# ----------------------------- pure-JAX reference -----------------------------
def _ref_forward(params, positions, x, residual=None):
    f32 = jnp.float32
    w_attn = params["c_attn_w"].astype(f32)
    b_attn = params["c_attn_b"].astype(f32)
    w_proj = params["c_proj_w"].astype(f32)
    w_gu = params["gate_up_w"].astype(f32)
    w_down = params["mlp_c_proj_w"].astype(f32)

    def rmsnorm(x, res, w):
        z = x if res is None else x + res
        var = jnp.mean(z * z, axis=-1, keepdims=True)
        return z * jax.lax.rsqrt(var + EPS) * w, z

    h, residual = rmsnorm(x, residual, params["ln_1_w"])
    qkv = h @ w_attn + b_attn
    q, k, v = jnp.split(qkv, 3, axis=-1)
    t = x.shape[0]
    q = q.reshape(t, NUM_HEADS, HEAD_DIM)
    k = k.reshape(t, NUM_HEADS, HEAD_DIM)
    v = v.reshape(t, NUM_HEADS, HEAD_DIM)
    inv_freq = 1.0 / (ROPE_THETA ** (jnp.arange(0, HEAD_DIM, 2, dtype=f32) / HEAD_DIM))
    freqs = positions.astype(f32)[:, None] * inv_freq[None, :]
    cos, sin = jnp.cos(freqs)[:, None, :], jnp.sin(freqs)[:, None, :]

    def rope(x):
        x1, x2 = x[..., :HEAD_DIM // 2], x[..., HEAD_DIM // 2:]
        return jnp.concatenate([x1 * cos - x2 * sin, x2 * cos + x1 * sin], axis=-1)

    q, k = rope(q), rope(k)
    s = jnp.einsum("qhd,khd->hqk", q, k) * (HEAD_DIM ** -0.5)
    mask = jnp.tril(jnp.ones((t, t), bool))
    s = jnp.where(mask[None], s, -jnp.inf)
    p = jax.nn.softmax(s, axis=-1)
    o = jnp.einsum("hqk,khd->qhd", p, v).reshape(t, HIDDEN_SIZE)
    o = o @ w_proj
    h, residual = rmsnorm(o, residual, params["ln_2_w"])
    gu = h @ w_gu
    g, u = gu[:, :MLP_INTERMEDIATE], gu[:, MLP_INTERMEDIATE:]
    mlp = (g * jax.nn.sigmoid(g) * u) @ w_down
    return mlp, residual


# ----------------------------- main -------------------------------------------
def _init_params(key):
    ks = jax.random.split(key, 8)
    nf32 = lambda k, shape, s: (s * jax.random.normal(k, shape)).astype(jnp.float32)
    nbf16 = lambda k, shape, s=0.02: (s * jax.random.normal(k, shape)).astype(jnp.bfloat16)
    return {
        "ln_1_w": 1.0 + nf32(ks[0], (HIDDEN_SIZE,), 0.01),
        "ln_2_w": 1.0 + nf32(ks[1], (HIDDEN_SIZE,), 0.01),
        "c_attn_w": nbf16(ks[2], (HIDDEN_SIZE, 3 * HIDDEN_SIZE)),
        "c_attn_b": nf32(ks[3], (3 * HIDDEN_SIZE,), 0.02),
        "c_proj_w": nbf16(ks[4], (HIDDEN_SIZE, HIDDEN_SIZE)),
        "gate_up_w": nbf16(ks[5], (HIDDEN_SIZE, 2 * MLP_INTERMEDIATE)),
        "mlp_c_proj_w": nbf16(ks[6], (MLP_INTERMEDIATE, HIDDEN_SIZE)),
    }


if __name__ == "__main__":
    key = jax.random.PRNGKey(0)
    pkey, xkey = jax.random.split(key)
    params = _init_params(pkey)
    prep = prepare_params(params)

    positions = jnp.arange(SEQ_LEN, dtype=jnp.int32)
    hidden_states = jax.random.normal(xkey, (SEQ_LEN, HIDDEN_SIZE), dtype=jnp.float32)

    # ---- first block call: residual is None (ln_1 with no fused add) ----
    out1, res1 = qwen_block_forward(prep, positions, hidden_states, residual=None)
    out1 = jax.block_until_ready(out1)
    res1 = jax.block_until_ready(res1)
    ref_out1, ref_res1 = _ref_forward(params, positions, hidden_states, residual=None)
    assert jnp.allclose(out1, ref_out1, rtol=1e-2, atol=1e-2), "output mismatch (call 1)"
    assert jnp.allclose(res1, ref_res1, rtol=1e-2, atol=1e-2), "residual mismatch (call 1)"

    # ---- second block call: residual provided (fused add path) ----
    out2, res2 = qwen_block_forward(prep, positions, out1, residual=res1)
    out2 = jax.block_until_ready(out2)
    res2 = jax.block_until_ready(res2)
    ref_out2, ref_res2 = _ref_forward(params, positions, out1, residual=res1)
    assert jnp.allclose(out2, ref_out2, rtol=1e-2, atol=1e-2), "output mismatch (call 2)"
    assert jnp.allclose(res2, ref_res2, rtol=1e-2, atol=1e-2), "residual mismatch (call 2)"

    print("KERNEL_OK")
</pallas_src>

<mosaic_0001>
module attributes {stable_mosaic.version = 11 : i64} {
  func.func @_qwen_block_kernel(%arg0: memref<16x128xf32, #tpu.memory_space<vmem>>, %arg1: memref<16x1xf32, #tpu.memory_space<vmem>>, %arg2: memref<128x1024xbf16, #tpu.memory_space<vmem>>, %arg3: memref<256x128xbf16, #tpu.memory_space<vmem>>, %arg4: memref<1x768xf32, #tpu.memory_space<vmem>>, %arg5: memref<16x128xf32, #tpu.memory_space<vmem>>, %arg6: memref<16x128xf32, #tpu.memory_space<vmem>>) attributes {dimension_semantics = [], scalar_prefetch = 0 : i64, scratch_operands = 0 : i64, tpu.core_type = #tpu.core_type<tc>} {
    %c0 = arith.constant 0 : index
    %c0_0 = arith.constant 0 : index
    %0 = vector.load %arg4[%c0, %c0_0] : memref<1x768xf32, #tpu.memory_space<vmem>>, vector<1x128xf32>
    %c0_1 = arith.constant 0 : index
    %c128 = arith.constant 128 : index
    %1 = vector.load %arg4[%c0_1, %c128] : memref<1x768xf32, #tpu.memory_space<vmem>>, vector<1x128xf32>
    %c0_2 = arith.constant 0 : index
    %c256 = arith.constant 256 : index
    %2 = vector.load %arg4[%c0_2, %c256] : memref<1x768xf32, #tpu.memory_space<vmem>>, vector<1x384xf32>
    %c0_3 = arith.constant 0 : index
    %c640 = arith.constant 640 : index
    %3 = vector.load %arg4[%c0_3, %c640] : memref<1x768xf32, #tpu.memory_space<vmem>>, vector<1x128xf32>
    %c0_4 = arith.constant 0 : index
    %c0_5 = arith.constant 0 : index
    %4 = vector.load %arg0[%c0_4, %c0_5] : memref<16x128xf32, #tpu.memory_space<vmem>>, vector<16x128xf32>
    %5 = arith.mulf %4, %4 : vector<16x128xf32>
    %cst = arith.constant dense<0.000000e+00> : vector<16xf32>
    %6 = vector.multi_reduction <add>, %5, %cst [1] : vector<16x128xf32> to vector<16xf32>
    %7 = vector.shape_cast %6 : vector<16xf32> to vector<16x1xf32>
    %cst_6 = arith.constant 1.280000e+02 : f32
    %8 = vector.broadcast %cst_6 : f32 to vector<16x1xf32>
    %9 = arith.divf %7, %8 : vector<16x1xf32>
    %cst_7 = arith.constant 9.99999997E-7 : f32
    %10 = vector.broadcast %cst_7 : f32 to vector<16x1xf32>
    %11 = arith.addf %9, %10 : vector<16x1xf32>
    %12 = math.rsqrt %11 : vector<16x1xf32>
    %13 = vector.broadcast %12 : vector<16x1xf32> to vector<16x128xf32>
    %14 = arith.mulf %4, %13 : vector<16x128xf32>
    %15 = vector.broadcast %0 : vector<1x128xf32> to vector<16x128xf32>
    %16 = arith.mulf %14, %15 : vector<16x128xf32>
    %17 = arith.truncf %16 : vector<16x128xf32> to vector<16x128xbf16>
    %c0_8 = arith.constant 0 : index
    %c0_9 = arith.constant 0 : index
    %18 = vector.load %arg2[%c0_8, %c0_9] : memref<128x1024xbf16, #tpu.memory_space<vmem>>, vector<128x384xbf16>
    %cst_10 = arith.constant dense<0.000000e+00> : vector<16x384xf32>
    %19 = tpu.matmul %17, %18, %cst_10 {dimension_numbers = #tpu.dot_dimension_numbers<[1], [0], [0], [1], [0, 0, 1, 1], [], []>} : vector<16x128xbf16>, vector<128x384xbf16>, vector<16x384xf32> -> vector<16x384xf32>
    %20 = vector.broadcast %2 : vector<1x384xf32> to vector<16x384xf32>
    %21 = arith.addf %19, %20 : vector<16x384xf32>
    %22 = vector.extract_strided_slice %21 {offsets = [0, 0], sizes = [16, 128], strides = [1, 1]} : vector<16x384xf32> to vector<16x128xf32>
    %23 = vector.extract_strided_slice %21 {offsets = [0, 128], sizes = [16, 128], strides = [1, 1]} : vector<16x384xf32> to vector<16x128xf32>
    %24 = vector.extract_strided_slice %21 {offsets = [0, 256], sizes = [16, 128], strides = [1, 1]} : vector<16x384xf32> to vector<16x128xf32>
    %c0_11 = arith.constant 0 : index
    %c0_12 = arith.constant 0 : index
    %25 = vector.load %arg1[%c0_11, %c0_12] : memref<16x1xf32, #tpu.memory_space<vmem>>, vector<16x1xf32>
    %26 = vector.broadcast %25 : vector<16x1xf32> to vector<16x128xf32>
    %27 = vector.broadcast %3 : vector<1x128xf32> to vector<16x128xf32>
    %28 = arith.mulf %26, %27 : vector<16x128xf32>
    %29 = math.cos %28 : vector<16x128xf32>
    %30 = math.sin %28 : vector<16x128xf32>
    %31 = arith.mulf %22, %29 : vector<16x128xf32>
    %32 = vector.extract_strided_slice %22 {offsets = [0, 0], sizes = [16, 32], strides = [1, 1]} : vector<16x128xf32> to vector<16x32xf32>
    %33 = vector.extract_strided_slice %22 {offsets = [0, 32], sizes = [16, 32], strides = [1, 1]} : vector<16x128xf32> to vector<16x32xf32>
    %34 = vector.extract_strided_slice %22 {offsets = [0, 64], sizes = [16, 32], strides = [1, 1]} : vector<16x128xf32> to vector<16x32xf32>
    %35 = vector.extract_strided_slice %22 {offsets = [0, 96], sizes = [16, 32], strides = [1, 1]} : vector<16x128xf32> to vector<16x32xf32>
    %36 = tpu.concatenate %33, %32, %35, %34 in 1 : vector<16x32xf32>, vector<16x32xf32>, vector<16x32xf32>, vector<16x32xf32> -> vector<16x128xf32>
    %37 = arith.mulf %36, %30 : vector<16x128xf32>
    %38 = arith.addf %31, %37 : vector<16x128xf32>
    %cst_13 = arith.constant 1.250000e-01 : f32
    %39 = vector.broadcast %cst_13 : f32 to vector<16x128xf32>
    %40 = arith.mulf %38, %39 : vector<16x128xf32>
    %41 = arith.truncf %40 : vector<16x128xf32> to vector<16x128xbf16>
    %42 = arith.mulf %23, %29 : vector<16x128xf32>
    %43 = vector.extract_strided_slice %23 {offsets = [0, 0], sizes = [16, 32], strides = [1, 1]} : vector<16x128xf32> to vector<16x32xf32>
    %44 = vector.extract_strided_slice %23 {offsets = [0, 32], sizes = [16, 32], strides = [1, 1]} : vector<16x128xf32> to vector<16x32xf32>
    %45 = vector.extract_strided_slice %23 {offsets = [0, 64], sizes = [16, 32], strides = [1, 1]} : vector<16x128xf32> to vector<16x32xf32>
    %46 = vector.extract_strided_slice %23 {offsets = [0, 96], sizes = [16, 32], strides = [1, 1]} : vector<16x128xf32> to vector<16x32xf32>
    %47 = tpu.concatenate %44, %43, %46, %45 in 1 : vector<16x32xf32>, vector<16x32xf32>, vector<16x32xf32>, vector<16x32xf32> -> vector<16x128xf32>
    %48 = arith.mulf %47, %30 : vector<16x128xf32>
    %49 = arith.addf %42, %48 : vector<16x128xf32>
    %50 = arith.truncf %49 : vector<16x128xf32> to vector<16x128xbf16>
    %51 = arith.truncf %24 : vector<16x128xf32> to vector<16x128xbf16>
    %52 = tpu.iota {dimensions = array<i32: 0>} : vector<16x16xi32>
    %53 = tpu.iota {dimensions = array<i32: 1>} : vector<16x16xi32>
    %54 = arith.cmpi sle, %53, %52 : vector<16x16xi32>
    %55 = vector.extract_strided_slice %41 {offsets = [0, 0], sizes = [16, 64], strides = [1, 1]} : vector<16x128xbf16> to vector<16x64xbf16>
    %56 = vector.extract_strided_slice %50 {offsets = [0, 0], sizes = [16, 64], strides = [1, 1]} : vector<16x128xbf16> to vector<16x64xbf16>
    %cst_14 = arith.constant dense<0.000000e+00> : vector<16x16xf32>
    %57 = tpu.matmul %55, %56, %cst_14 {dimension_numbers = #tpu.dot_dimension_numbers<[1], [1], [0], [0], [0, 0, 1, 0], [], []>} : vector<16x64xbf16>, vector<16x64xbf16>, vector<16x16xf32> -> vector<16x16xf32>
    %cst_15 = arith.constant 0xFF800000 : f32
    %58 = vector.broadcast %cst_15 : f32 to vector<16x16xf32>
    %59 = arith.select %54, %57, %58 : vector<16x16xi1>, vector<16x16xf32>
    %cst_16 = arith.constant dense<0xFF800000> : vector<16xf32>
    %60 = vector.multi_reduction <maximumf>, %59, %cst_16 [1] : vector<16x16xf32> to vector<16xf32>
    %61 = vector.shape_cast %60 : vector<16xf32> to vector<16x1xf32>
    %62 = vector.broadcast %61 : vector<16x1xf32> to vector<16x16xf32>
    %63 = arith.subf %59, %62 : vector<16x16xf32>
    %64 = math.exp %63 : vector<16x16xf32>
    %cst_17 = arith.constant dense<0.000000e+00> : vector<16xf32>
    %65 = vector.multi_reduction <add>, %64, %cst_17 [1] : vector<16x16xf32> to vector<16xf32>
    %66 = vector.shape_cast %65 : vector<16xf32> to vector<16x1xf32>
    %67 = vector.broadcast %66 : vector<16x1xf32> to vector<16x16xf32>
    %68 = arith.divf %64, %67 : vector<16x16xf32>
    %69 = arith.truncf %68 : vector<16x16xf32> to vector<16x16xbf16>
    %70 = vector.extract_strided_slice %51 {offsets = [0, 0], sizes = [16, 64], strides = [1, 1]} : vector<16x128xbf16> to vector<16x64xbf16>
    %cst_18 = arith.constant dense<0.000000e+00> : vector<16x64xf32>
    %71 = tpu.matmul %69, %70, %cst_18 {dimension_numbers = #tpu.dot_dimension_numbers<[1], [0], [0], [1], [0, 0, 1, 1], [], []>} : vector<16x16xbf16>, vector<16x64xbf16>, vector<16x64xf32> -> vector<16x64xf32>
    %72 = arith.truncf %71 : vector<16x64xf32> to vector<16x64xbf16>
    %73 = vector.extract_strided_slice %41 {offsets = [0, 64], sizes = [16, 64], strides = [1, 1]} : vector<16x128xbf16> to vector<16x64xbf16>
    %74 = vector.extract_strided_slice %50 {offsets = [0, 64], sizes = [16, 64], strides = [1, 1]} : vector<16x128xbf16> to vector<16x64xbf16>
    %cst_19 = arith.constant dense<0.000000e+00> : vector<16x16xf32>
    %75 = tpu.matmul %73, %74, %cst_19 {dimension_numbers = #tpu.dot_dimension_numbers<[1], [1], [0], [0], [0, 0, 1, 0], [], []>} : vector<16x64xbf16>, vector<16x64xbf16>, vector<16x16xf32> -> vector<16x16xf32>
    %cst_20 = arith.constant 0xFF800000 : f32
    %76 = vector.broadcast %cst_20 : f32 to vector<16x16xf32>
    %77 = arith.select %54, %75, %76 : vector<16x16xi1>, vector<16x16xf32>
    %cst_21 = arith.constant dense<0xFF800000> : vector<16xf32>
    %78 = vector.multi_reduction <maximumf>, %77, %cst_21 [1] : vector<16x16xf32> to vector<16xf32>
    %79 = vector.shape_cast %78 : vector<16xf32> to vector<16x1xf32>
    %80 = vector.broadcast %79 : vector<16x1xf32> to vector<16x16xf32>
    %81 = arith.subf %77, %80 : vector<16x16xf32>
    %82 = math.exp %81 : vector<16x16xf32>
    %cst_22 = arith.constant dense<0.000000e+00> : vector<16xf32>
    %83 = vector.multi_reduction <add>, %82, %cst_22 [1] : vector<16x16xf32> to vector<16xf32>
    %84 = vector.shape_cast %83 : vector<16xf32> to vector<16x1xf32>
    %85 = vector.broadcast %84 : vector<16x1xf32> to vector<16x16xf32>
    %86 = arith.divf %82, %85 : vector<16x16xf32>
    %87 = arith.truncf %86 : vector<16x16xf32> to vector<16x16xbf16>
    %88 = vector.extract_strided_slice %51 {offsets = [0, 64], sizes = [16, 64], strides = [1, 1]} : vector<16x128xbf16> to vector<16x64xbf16>
    %cst_23 = arith.constant dense<0.000000e+00> : vector<16x64xf32>
    %89 = tpu.matmul %87, %88, %cst_23 {dimension_numbers = #tpu.dot_dimension_numbers<[1], [0], [0], [1], [0, 0, 1, 1], [], []>} : vector<16x16xbf16>, vector<16x64xbf16>, vector<16x64xf32> -> vector<16x64xf32>
    %90 = arith.truncf %89 : vector<16x64xf32> to vector<16x64xbf16>
    %91 = tpu.concatenate %72, %90 in 1 : vector<16x64xbf16>, vector<16x64xbf16> -> vector<16x128xbf16>
    %c0_24 = arith.constant 0 : index
    %c384 = arith.constant 384 : index
    %92 = vector.load %arg2[%c0_24, %c384] : memref<128x1024xbf16, #tpu.memory_space<vmem>>, vector<128x128xbf16>
    %cst_25 = arith.constant dense<0.000000e+00> : vector<16x128xf32>
    %93 = tpu.matmul %91, %92, %cst_25 {dimension_numbers = #tpu.dot_dimension_numbers<[1], [0], [0], [1], [0, 0, 1, 1], [], []>} : vector<16x128xbf16>, vector<128x128xbf16>, vector<16x128xf32> -> vector<16x128xf32>
    %94 = arith.addf %93, %4 : vector<16x128xf32>
    %c0_26 = arith.constant 0 : index
    %c0_27 = arith.constant 0 : index
    %95 = vector.load %arg6[%c0_26, %c0_27] : memref<16x128xf32, #tpu.memory_space<vmem>>, vector<16x128xf32>
    tpu.vector_store %arg6[%c0_26, %c0_27], %94 {strides = array<i32>} : memref<16x128xf32, #tpu.memory_space<vmem>>, vector<16x128xf32>,
    %96 = arith.mulf %94, %94 : vector<16x128xf32>
    %cst_28 = arith.constant dense<0.000000e+00> : vector<16xf32>
    %97 = vector.multi_reduction <add>, %96, %cst_28 [1] : vector<16x128xf32> to vector<16xf32>
    %98 = vector.shape_cast %97 : vector<16xf32> to vector<16x1xf32>
    %cst_29 = arith.constant 1.280000e+02 : f32
    %99 = vector.broadcast %cst_29 : f32 to vector<16x1xf32>
    %100 = arith.divf %98, %99 : vector<16x1xf32>
    %cst_30 = arith.constant 9.99999997E-7 : f32
    %101 = vector.broadcast %cst_30 : f32 to vector<16x1xf32>
    %102 = arith.addf %100, %101 : vector<16x1xf32>
    %103 = math.rsqrt %102 : vector<16x1xf32>
    %104 = vector.broadcast %103 : vector<16x1xf32> to vector<16x128xf32>
    %105 = arith.mulf %94, %104 : vector<16x128xf32>
    %106 = vector.broadcast %1 : vector<1x128xf32> to vector<16x128xf32>
    %107 = arith.mulf %105, %106 : vector<16x128xf32>
    %108 = arith.truncf %107 : vector<16x128xf32> to vector<16x128xbf16>
    %c0_31 = arith.constant 0 : index
    %c512 = arith.constant 512 : index
    %109 = vector.load %arg2[%c0_31, %c512] : memref<128x1024xbf16, #tpu.memory_space<vmem>>, vector<128x512xbf16>
    %cst_32 = arith.constant dense<0.000000e+00> : vector<16x512xf32>
    %110 = tpu.matmul %108, %109, %cst_32 {dimension_numbers = #tpu.dot_dimension_numbers<[1], [0], [0], [1], [0, 0, 1, 1], [], []>} : vector<16x128xbf16>, vector<128x512xbf16>, vector<16x512xf32> -> vector<16x512xf32>
    %111 = vector.extract_strided_slice %110 {offsets = [0, 0], sizes = [16, 256], strides = [1, 1]} : vector<16x512xf32> to vector<16x256xf32>
    %112 = vector.extract_strided_slice %110 {offsets = [0, 256], sizes = [16, 256], strides = [1, 1]} : vector<16x512xf32> to vector<16x256xf32>
    %113 = arith.negf %111 : vector<16x256xf32>
    %114 = math.exp %113 : vector<16x256xf32>
    %cst_33 = arith.constant 1.000000e+00 : f32
    %115 = vector.broadcast %cst_33 : f32 to vector<16x256xf32>
    %116 = arith.addf %115, %114 : vector<16x256xf32>
    %117 = arith.divf %115, %116 : vector<16x256xf32>
    %118 = arith.mulf %111, %117 : vector<16x256xf32>
    %119 = arith.mulf %118, %112 : vector<16x256xf32>
    %120 = arith.truncf %119 : vector<16x256xf32> to vector<16x256xbf16>
    %c0_34 = arith.constant 0 : index
    %c0_35 = arith.constant 0 : index
    %121 = vector.load %arg3[%c0_34, %c0_35] : memref<256x128xbf16, #tpu.memory_space<vmem>>, vector<256x128xbf16>
    %cst_36 = arith.constant dense<0.000000e+00> : vector<16x128xf32>
    %122 = tpu.matmul %120, %121, %cst_36 {dimension_numbers = #tpu.dot_dimension_numbers<[1], [0], [0], [1], [0, 0, 1, 1], [], []>} : vector<16x256xbf16>, vector<256x128xbf16>, vector<16x128xf32> -> vector<16x128xf32>
    %c0_37 = arith.constant 0 : index
    %c0_38 = arith.constant 0 : index
    %123 = vector.load %arg5[%c0_37, %c0_38] : memref<16x128xf32, #tpu.memory_space<vmem>>, vector<16x128xf32>
    tpu.vector_store %arg5[%c0_37, %c0_38], %122 {strides = array<i32>} : memref<16x128xf32, #tpu.memory_space<vmem>>, vector<16x128xf32>,
    return
  }
}

</mosaic_0001>

<bundles_post_ra>
// kernel: tpu_custom_call.1
= control target key start
LH: loop header
LB: loop body
LE: loop exit
PB: predicated region body
PF: predicated region fallthrough
CT: control target
= control target key end

     0   :  { %12 = vsyncpa [#allocation3], 0  ;;  %s2990_s0 = inlined_call_operand.vmem [shape: f32[16,128], index: 0, kind: input, shape index: {}]   ;;  %s2991_s1 = inlined_call_operand.vmem [shape: f32[16,1], index: 1, kind: input, shape index: {}]   ;;  %s2992_s2 = inlined_call_operand.hbm [shape: bf16[128,1024], index: 2, kind: input, shape index: {}]   ;;  %s2993_s3 = inlined_call_operand.hbm [shape: bf16[256,128], index: 3, kind: input, shape index: {}]   ;;  %s2994_s4 = inlined_call_operand.hbm [shape: f32[1,768], index: 4, kind: input, shape index: {}]   ;;  %s2995_s5 = inlined_call_operand.hbm [shape: f32[16,128], index: 5, kind: output, shape index: {0}]   ;;  %s2996_s6 = inlined_call_operand.hbm [shape: f32[16,128], index: 6, kind: output, shape index: {1}]  }
   0x1   :  { %13 = vsyncpa [#allocation6], 0 }
   0x2   :  { %14 = vsyncpa [#allocation4], 0  ;;  %s37_s23 = sshll.u32 %s2993_s3, 4  ;;  %s38_s23 = int_to_ptr.hbm [resolvable:$true] %s37_s23 }
   0x3   :  { %15 = vsyncpa [#allocation10], 0  ;;  %s2520_s24 = smov [#allocation5]   ;;  %s24_s28 = sshll.u32 %s2992_s2, 4  ;;  %s25_s28 = int_to_ptr.hbm [resolvable:$true] %s24_s28 }
   0x4   :  { %s39_s25 = sshll.u32 %s2520_s24, 4  ;;  %s2521_s29 = smov 64   ;;  %s40_s25 = int_to_ptr.vmem [resolvable:$true] %s39_s25 }
   0x5   :  { %s2522_s30 = smov 4   ;;  %s2523_s7 = smov [#allocation2]  }
   0x6   :  { %45 = dma.hbm_to_vmem [thread:$0]  %s38_s23, 2048, %s40_s25, [#allocation6], %s2521_s29, %s2521_s29, %s2522_s30  }
   0x7   :  { %s26_s8 = sshll.u32 %s2523_s7, 4  ;;  %s2524_s9 = smov 512   ;;  %s27_s8 = int_to_ptr.vmem [resolvable:$true] %s26_s8 }
   0x8   :  { %s2525_s3 = smov 32   ;;  %s51_s12 = sshll.u32 %s2994_s4, 4  ;;  %s52_s12 = int_to_ptr.hbm [resolvable:$true] %s51_s12 }
   0x9   :  { %32 = dma.hbm_to_vmem [thread:$0]  %s25_s28, 8192, %s27_s8, [#allocation3], %s2524_s9, %s2524_s9, %s2525_s3  }
   0xa   :  { %s2526_s13 = smov [#allocation7]  }
   0xb   :  { %s53_s2 = sshll.u32 %s2526_s13, 4  ;;  %s54_s2 = int_to_ptr.vmem [resolvable:$true] %s53_s2 }
   0xc   :  { %56 = dma.hbm_to_vmem [thread:$0]  %s52_s12, 96, %s54_s2, [#allocation6]  }
   0xd   :  { %2512 = dma.done.wait [#allocation3], 8192  }
   0xe   :  { %2513 = vsyncadd [#allocation3], 4294959104 }
   0xf   :  { %2514 = dma.done.wait [#allocation6], 2144  }
  0x10   :  { %2515 = vsyncadd [#allocation6], 4294965152  ;;  %v2527_v0 = vmov 0   ;;  %v2592_v1 = vld [vmem:[%s2990_s0] sm:$0xff]  ;;  %v2602_v4 = vld [vmem:[%s2990_s0 + $0x8] sm:$0xff]  ;;  %v2528_v14 = vmov 128.0  }
  0x11   :  { %2343 = vset.pattern.permute.xlu1 %v2527_v0  ;;  %2344 = vset.pattern.permute.xlu0 %v2527_v0  ;;  %v330_v2 = vld [vmem:[%s2991_s1] sm:$0xff]  ;;  %v76_v3 = vmul.f32 %v2592_v1, %v2592_v1  ;;  %v331_v5 = vld [vmem:[%s2991_s1 + $0x8] sm:$0xff]  ;;  %v77_v6 = vmul.f32 %v2602_v4, %v2602_v4  ;;  %2348 = vrcp.f32 %v2528_v14  ;;  %s2535_s1 = smov 96   ;;  %s1884_s28 = sshll.u32 %s2996_s6, 4  ;;  %s1885_s28 = int_to_ptr.hbm [resolvable:$true] %s1884_s28 }
  0x12   :  { %334 = vperm.xlu1 %2343, %v330_v2   ;;  %v1989_v7 = vld [vmem:[#allocation2 + $0x1c0] sm:$0xf]  ;;  %v2264_v9 = vld [vmem:[#allocation2 + $0x1c4] sm:$0xf]  ;;  %v1997_v12 = vld [vmem:[#allocation2 + $0x1c8] sm:$0xf] }
  0x13   :  { %78 = vadd.xlane.f32.xlu0 %v76_v3  ;;  %v2265_v8 = vld [vmem:[#allocation2 + $0x1dc] sm:$0xf0]  ;;  %v1991_v11 = vld [vmem:[#allocation2 + $0x1e0] sm:$0xf0]  ;;  %v2266_v13 = vld [vmem:[#allocation2 + $0x1e4] sm:$0xf0] }
  0x14   :  { %v1990_v10 = vor.u32 %v2265_v8, %v1989_v7  ;;  %v1994_v15 = vor.u32 %v2264_v9, %v1991_v11  ;;  %v1998_v16 = vor.u32 %v2266_v13, %v1997_v12  ;;  %v1977_v17 = vld [vmem:[#allocation2 + $0x180] sm:$0xf]  ;;  %v2261_v19 = vld [vmem:[#allocation2 + $0x184] sm:$0xf]  ;;  %v1985_v22 = vld [vmem:[#allocation2 + $0x188] sm:$0xf] }
  0x15   :  { %v2262_v18 = vld [vmem:[#allocation2 + $0x19c] sm:$0xf0]  ;;  %v1979_v21 = vld [vmem:[#allocation2 + $0x1a0] sm:$0xf0]  ;;  %v2263_v23 = vld [vmem:[#allocation2 + $0x1a4] sm:$0xf0] }
  0x16   :  { %288 = vmatpush.bf16.msra.mxu0 %v1990_v10  ;;  %302 = vmatpush.bf16.msra.mxu1 %v1994_v15  ;;  %v1978_v20 = vor.u32 %v2262_v18, %v1977_v17  ;;  %v1982_v24 = vor.u32 %v2261_v19, %v1979_v21  ;;  %v1986_v25 = vor.u32 %v2263_v23, %v1985_v22  ;;  %v1965_v27 = vld [vmem:[#allocation2 + $0x140] sm:$0xf]  ;;  %v2258_v29 = vld [vmem:[#allocation2 + $0x144] sm:$0xf]  ;;  %v1973_v32 = vld [vmem:[#allocation2 + $0x148] sm:$0xf] }
  0x17   :  { %316 = vmatpush.bf16.msra.mxu2 %v1998_v16  ;;  %v2609_v26 = vpop.eup %2348  ;;  %v2259_v28 = vld [vmem:[#allocation2 + $0x15c] sm:$0xf0]  ;;  %v1967_v31 = vld [vmem:[#allocation2 + $0x160] sm:$0xf0]  ;;  %v2260_v33 = vld [vmem:[#allocation2 + $0x164] sm:$0xf0] }
  0x18   :  { %v1966_v30 = vor.u32 %v2259_v28, %v1965_v27  ;;  %v1970_v34 = vor.u32 %v2258_v29, %v1967_v31  ;;  %v1974_v35 = vor.u32 %v2260_v33, %v1973_v32  ;;  %v83_v36 = vmul.f32 128.0, %v2609_v26  ;;  %v1953_v37 = vld [vmem:[#allocation2 + $0x100] sm:$0xf]  ;;  %v2255_v39 = vld [vmem:[#allocation2 + $0x104] sm:$0xf]  ;;  %s2538_s30 = smov 8  }
  0x19   :  { %v2256_v38 = vld [vmem:[#allocation2 + $0x11c] sm:$0xf0]  ;;  %v1955_v41 = vld [vmem:[#allocation2 + $0x120] sm:$0xf0]  ;;  %v1961_v42 = vld [vmem:[#allocation2 + $0x108] sm:$0xf]  ;;  %vm87_vm0 = vweird.f32 %v2609_v26 }
  0x1a   :  { %339 = vperm.xlu1 %2343, %v331_v5   ;;  %289 = vmatpush.bf16.msra.mxu0 %v1978_v20  ;;  %v1954_v40 = vor.u32 %v2256_v38, %v1953_v37  ;;  %v2257_v43 = vld [vmem:[#allocation2 + $0x124] sm:$0xf0]  ;;  %v1958_v44 = vor.u32 %v2255_v39, %v1955_v41  ;;  %v84_v46 = vsub.f32 1.0, %v83_v36  ;;  %v1941_v47 = vld [vmem:[#allocation2 + $0xc0] sm:$0xf]  ;;  %s2539_s7 = smov [#allocation8]  }
  0x1b   :  { %80 = vadd.xlane.f32.xlu0 %v77_v6  ;;  %303 = vmatpush.bf16.msra.mxu1 %v1982_v24  ;;  %v1962_v45 = vor.u32 %v2257_v43, %v1961_v42  ;;  %v2253_v48 = vld [vmem:[#allocation2 + $0xdc] sm:$0xf0]  ;;  %v2252_v49 = vld [vmem:[#allocation2 + $0xc4] sm:$0xf]  ;;  %v1949_v52 = vld [vmem:[#allocation2 + $0xc8] sm:$0xf] }
  0x1c   :  { %317 = vmatpush.bf16.msra.mxu2 %v1986_v25  ;;  %v1942_v50 = vor.u32 %v2253_v48, %v1941_v47  ;;  %v1943_v51 = vld [vmem:[#allocation2 + $0xe0] sm:$0xf0]  ;;  %v2254_v53 = vld [vmem:[#allocation2 + $0xe4] sm:$0xf0]  ;;  %v85_v56 = vmul.f32 %v2609_v26, %v84_v46  ;;  %v1929_v57 = vld [vmem:[#allocation2 + $0x80] sm:$0xf] }
  0x1d   :  { %v1946_v54 = vor.u32 %v2252_v49, %v1943_v51  ;;  %v1950_v55 = vor.u32 %v2254_v53, %v1949_v52  ;;  %v2250_v58 = vld [vmem:[#allocation2 + $0x9c] sm:$0xf0]  ;;  %v2249_v59 = vld [vmem:[#allocation2 + $0x84] sm:$0xf]  ;;  %v1937_v62 = vld [vmem:[#allocation2 + $0x88] sm:$0xf] }
  0x1e   :  { %290 = vmatpush.bf16.msra.mxu0 %v1966_v30  ;;  %v1930_v60 = vor.u32 %v2250_v58, %v1929_v57  ;;  %v1931_v61 = vld [vmem:[#allocation2 + $0xa0] sm:$0xf0]  ;;  %v2251_v63 = vld [vmem:[#allocation2 + $0xa4] sm:$0xf0]  ;;  %v86_v5 = vadd.f32 %v2609_v26, %v85_v56  ;;  %v1917_v6 = vld [vmem:[#allocation2 + $0x40] sm:$0xf] }
  0x1f   :  { %304 = vmatpush.bf16.msra.mxu1 %v1970_v34  ;;  %v1934_v2 = vor.u32 %v2249_v59, %v1931_v61  ;;  %v1938_v3 = vor.u32 %v2251_v63, %v1937_v62  ;;  %v2247_v7 = vld [vmem:[#allocation2 + $0x5c] sm:$0xf0]  ;;  %v2246_v8 = vld [vmem:[#allocation2 + $0x44] sm:$0xf]  ;;  %v1925_v11 = vld [vmem:[#allocation2 + $0x48] sm:$0xf] }
  0x20   :  { %318 = vmatpush.bf16.msra.mxu2 %v1974_v35  ;;  %v1918_v9 = vor.u32 %v2247_v7, %v1917_v6  ;;  %v1919_v10 = vld [vmem:[#allocation2 + $0x60] sm:$0xf0]  ;;  %v2248_v12 = vld [vmem:[#allocation2 + $0x64] sm:$0xf0]  ;;  %v2616_v15 = vsel %vm87_vm0, %v2609_v26, %v86_v5  ;;  %v1905_v16 = vld [vmem:[#allocation2] sm:$0xf] }
  0x21   :  { %v1922_v13 = vor.u32 %v2246_v8, %v1919_v10  ;;  %v1926_v14 = vor.u32 %v2248_v12, %v1925_v11  ;;  %v2244_v17 = vld [vmem:[#allocation2 + $0x1c] sm:$0xf0]  ;;  %v2243_v18 = vld [vmem:[#allocation2 + $0x4] sm:$0xf]  ;;  %v1913_v21 = vld [vmem:[#allocation2 + $0x8] sm:$0xf] }
  0x22   :  { %291 = vmatpush.bf16.msra.mxu0 %v1954_v40  ;;  %v1906_v19 = vor.u32 %v2244_v17, %v1905_v16  ;;  %v1907_v20 = vld [vmem:[#allocation2 + $0x20] sm:$0xf0]  ;;  %v2245_v22 = vld [vmem:[#allocation2 + $0x24] sm:$0xf0]  ;;  %v2529_v8 = vmov 2102212464  }
  0x23   :  { %305 = vmatpush.bf16.msra.mxu1 %v1958_v44  ;;  %v1910_v24 = vor.u32 %v2243_v18, %v1907_v20  ;;  %v1914_v25 = vor.u32 %v2245_v22, %v1913_v21  ;;  %v2346_v52 = vld [vmem:[#allocation7 + $0x5] ss:$0 sm:$0xff]  ;;  %v2530_v10 = vmov 920167782   ;;  %v2532_v17 = vmov 683565275  }
  0x24   :  { %319 = vmatpush.bf16.msra.mxu2 %v1962_v45  ;;  %v2345_v45 = vld [vmem:[#allocation7] ss:$0 sm:$0xff]  ;;  %v2534_v22 = vmov 2131351028   ;;  %s1869_s8 = sshll.u32 %s2539_s7, 4  ;;  %s1871_s10 = sshll.u32 %s2995_s5, 4  ;;  %s1870_s8 = int_to_ptr.vmem [resolvable:$true] %s1869_s8  ;;  %s1872_s10 = int_to_ptr.hbm [resolvable:$true] %s1871_s10 }
  0x26   :  { %292 = vmatpush.bf16.msra.mxu0 %v1942_v50 }
  0x27   :  { %306 = vmatpush.bf16.msra.mxu1 %v1946_v54 }
  0x28   :  { %320 = vmatpush.bf16.msra.mxu2 %v1950_v55 }
  0x2a   :  { %293 = vmatpush.bf16.msra.mxu0 %v1930_v60 }
  0x2b   :  { %307 = vmatpush.bf16.msra.mxu1 %v1934_v2 }
  0x2c   :  { %321 = vmatpush.bf16.msra.mxu2 %v1938_v3 }
  0x2e   :  { %294 = vmatpush.bf16.msra.mxu0 %v1918_v9 }
  0x2f   :  { %308 = vmatpush.bf16.msra.mxu1 %v1922_v13  ;;  %v2531_v13 = vmov 1326507024  }
  0x30   :  { %322 = vmatpush.bf16.msra.mxu2 %v1926_v14 }
  0x32   :  { %295 = vmatpush.bf16.msra.mxu0 %v1906_v19  ;;  %v2533_v19 = vmov 2475754826  }
  0x33   :  { %309 = vmatpush.bf16.msra.mxu1 %v1910_v24 }
  0x34   :  { %323 = vmatpush.bf16.msra.mxu2 %v1914_v25 }
  0x84   :  { %v335_v51 = vpop.permute.xlu1 %334 }
  0x85   :  { %v2622_v53 = vmul.f32 %v2346_v52, %v335_v51 }
  0x86   :  { %v79_v23 = vpop.xlane.xlu0 %78 }
  0x87   :  { %v89_v27 = vmul.f32 %v2616_v15, %v79_v23  ;;  %v350_v55 = vand.u32 2139095040, %v2622_v53  ;;  %v347_v2 = vand.u32 2147483647, %v2622_v53 }
  0x89   :  { %v91_v28 = vadd.f32 1e-06, %v89_v27  ;;  %v354_v7 = vand.u32 8388607, %v347_v2 }
  0x8b   :  { %2350 = vrsqrt.f32 %v91_v28  ;;  %vm99_vm2 = vweird.f32 %v91_v28 }
  0x8c   :  { %v340_v54 = vpop.permute.xlu1 %339 }
  0x8d   :  { %v2625_v56 = vmul.f32 %v2346_v52, %v340_v54 }
  0x8e   :  { %v81_v26 = vpop.xlane.xlu0 %80 }
  0x8f   :  { %v90_v29 = vmul.f32 %v2616_v15, %v81_v26  ;;  %v504_v57 = vand.u32 2139095040, %v2625_v56 }
  0x91   :  { %v2351_v30 = vpop.eup %2350  ;;  %v92_v31 = vadd.f32 1e-06, %v90_v29 }
  0x92   :  { %v94_v32 = vmul.f32 %v2351_v30, %v91_v28  ;;  %vm100_vm1 = vweird.f32 %v2351_v30  ;;  %v355_v28 = vor.u32 8388608, %v354_v7 }
  0x93   :  { %2352 = vrsqrt.f32 %v92_v31  ;;  %vm101_vm3 = vmor %vm99_vm2, %vm100_vm1  ;;  %vm109_vm5 = vweird.f32 %v92_v31 }
  0x94   :  { %v95_v33 = vmul.f32 %v2351_v30, %v94_v32 }
  0x96   :  { %v96_v34 = vmul.f32 0.5, %v95_v33 }
  0x98   :  { %v97_v35 = vsub.f32 1.5, %v96_v34 }
  0x99   :  { %v2353_v36 = vpop.eup %2352 }
  0x9a   :  { %v104_v37 = vmul.f32 %v2353_v36, %v92_v31  ;;  %v98_v38 = vmul.f32 %v2351_v30, %v97_v35  ;;  %vm110_vm4 = vweird.f32 %v2353_v36  ;;  %v501_v31 = vand.u32 2147483647, %v2625_v56 }
  0x9b   :  { %vm111_vm6 = vmor %vm109_vm5, %vm110_vm4 }
  0x9c   :  { %v105_v39 = vmul.f32 %v2353_v36, %v104_v37  ;;  %v102_v41 = vsel %vm101_vm3, %v2351_v30, %v98_v38 }
  0x9d   :  { %v113_v44 = vmul.f32 %v102_v41, %v2592_v1  ;;  %v351_v1 = vshrl.u32 %v350_v55, 23  ;;  %v2682_v55 = vshll.u32 %v355_v28, 8 }
  0x9e   :  { %v106_v40 = vmul.f32 0.5, %v105_v39 }
  0x9f   :  { %v118_v48 = vmul.f32 %v2345_v45, %v113_v44  ;;  %v1999_v58 = vadd.s32 4294967169, %v351_v1 }
  0xa0   :  { %v107_v42 = vsub.f32 1.5, %v106_v40 }
  0xa1   :  { %v357_v59 = vadd.s32 1, %v1999_v58 }
  0xa2   :  { %v108_v43 = vmul.f32 %v2353_v36, %v107_v42 }
  0xa3   :  { %vm358_vm7 = vcmp.gt.s32.totalorder %v357_v59, 0 }
  0xa4   :  { %v112_v46 = vsel %vm111_vm6, %v2353_v36, %v108_v43  ;;  %v359_v62 = vsel %vm358_vm7, %v357_v59, 0 }
  0xa5   :  { %v114_v47 = vmul.f32 %v112_v46, %v2602_v4  ;;  %v505_v4 = vshrl.u32 %v504_v57, 23  ;;  %v361_v63 = vand.u32 31, %v359_v62  ;;  %v2635_v16 = vshrl.u32 %v359_v62, 5 }
  0xa7   :  { %v119_v49 = vmul.f32 %v2345_v45, %v114_v47  ;;  %v2002_v60 = vadd.s32 4294967169, %v505_v4  ;;  %v2629_v5 = vsub.s32 32, %v361_v63  ;;  %v373_v9 = vshll.u32 %v2529_v8, %v361_v63 }
  0xa8   :  { %v376_v12 = vshll.u32 %v2530_v10, %v361_v63  ;;  %v364_v18 = vshll.u32 %v2532_v17, %v361_v63  ;;  %v367_v21 = vshll.u32 %v2533_v19, %v361_v63  ;;  %v370_v24 = vshll.u32 %v2534_v22, %v361_v63 }
  0xa9   :  { %v120_v50 = vpack.c.bf16 %v119_v49, %v118_v48  ;;  %v511_v61 = vadd.s32 1, %v2002_v60  ;;  %v374_v11 = vshrl.u32 %v2530_v10, %v2629_v5  ;;  %v377_v14 = vshrl.u32 %v2531_v13, %v2629_v5 }
  0xaa   :  { %v365_v20 = vshrl.u32 %v2533_v19, %v2629_v5  ;;  %v368_v23 = vshrl.u32 %v2534_v22, %v2629_v5  ;;  %v371_v25 = vshrl.u32 %v2529_v8, %v2629_v5  ;;  %vm379_vm9 = vcmp.lt.s32.totalorder %v2635_v16, 1 }
  0xab   :  { %296 = vmatmul.bf16.vlgmr.msra.gmra.mxu0 %v120_v50  ;;  %310 = vmatmul.bf16.vlgmr.msra.gmra.mxu1 %v120_v50  ;;  %vm512_vm8 = vcmp.gt.s32.totalorder %v511_v61, 0  ;;  %v375_v26 = vor.u32 %v374_v11, %v373_v9  ;;  %v378_v29 = vor.u32 %v377_v14, %v376_v12  ;;  %vm382_vm10 = vcmp.lt.s32.totalorder %v2635_v16, 4 }
  0xac   :  { %324 = vmatmul.bf16.vlgmr.msra.gmra.mxu2 %v120_v50  ;;  %v513_v3 = vsel %vm512_vm8, %v511_v61, 0  ;;  %v2643_v30 = vor.u32 %v365_v20, %v364_v18  ;;  %v2648_v32 = vor.u32 %v368_v23, %v367_v21  ;;  %v2650_v33 = vor.u32 %v371_v25, %v370_v24 }
  0xad   :  { %v515_v6 = vand.u32 31, %v513_v3  ;;  %vm381_vm11 = vcmp.lt.s32.totalorder %v2635_v16, 3  ;;  %v2654_v36 = vshrl.u32 %v513_v3, 5  ;;  %v388_v39 = vsel %vm382_vm10, %v375_v26, 920167782 }
  0xae   :  { %v392_v40 = vsel %vm382_vm10, %v378_v29, 1326507024  ;;  %vm380_vm12 = vcmp.lt.s32.totalorder %v2635_v16, 2  ;;  %v508_v48 = vand.u32 8388607, %v501_v31  ;;  %v387_v50 = vsel %vm379_vm9, %v2643_v30, %v2648_v32 }
  0xaf   :  { %v2641_v27 = vsub.s32 32, %v515_v6  ;;  %v527_v34 = vshll.u32 %v2529_v8, %v515_v6  ;;  %v530_v37 = vshll.u32 %v2530_v10, %v515_v6  ;;  %v518_v41 = vshll.u32 %v2532_v17, %v515_v6 }
  0xb0   :  { %v521_v42 = vshll.u32 %v2533_v19, %v515_v6  ;;  %v524_v45 = vshll.u32 %v2534_v22, %v515_v6  ;;  %vm536_vm13 = vcmp.lt.s32.totalorder %v2654_v36, 4  ;;  %v389_v51 = vsel %vm381_vm11, %v2650_v33, %v388_v39 }
  0xb1   :  { %v528_v35 = vshrl.u32 %v2530_v10, %v2641_v27  ;;  %v531_v38 = vshrl.u32 %v2531_v13, %v2641_v27  ;;  %v519_v43 = vshrl.u32 %v2533_v19, %v2641_v27  ;;  %v522_v44 = vshrl.u32 %v2534_v22, %v2641_v27 }
  0xb2   :  { %v525_v46 = vshrl.u32 %v2529_v8, %v2641_v27  ;;  %v391_v52 = vsel %vm379_vm9, %v2648_v32, %v2650_v33  ;;  %v393_v54 = vsel %vm381_vm11, %v375_v26, %v392_v40  ;;  %vm533_vm14 = vcmp.lt.s32.totalorder %v2654_v36, 1 }
  0xb3   :  { %v529_v47 = vor.u32 %v528_v35, %v527_v34  ;;  %v532_v49 = vor.u32 %v531_v38, %v530_v37  ;;  %v2684_v1 = vor.u32 %v519_v43, %v518_v41  ;;  %v2686_v57 = vor.u32 %v522_v44, %v521_v42 }
  0xb4   :  { %v2688_v58 = vor.u32 %v525_v46, %v524_v45  ;;  %vm535_vm15 = vcmp.lt.s32.totalorder %v2654_v36, 3  ;;  %v390_v59 = vsel %vm380_vm12, %v387_v50, %v389_v51  ;;  %v394_v60 = vsel %vm380_vm12, %v391_v52, %v393_v54 }
  0xb5   :  { %v542_v4 = vsel %vm536_vm13, %v529_v47, 920167782  ;;  %v509_v61 = vor.u32 8388608, %v508_v48  ;;  %v546_v62 = vsel %vm536_vm13, %v532_v49, 1326507024  ;;  %v396_v63 = vand.u32 65535, %v2682_v55 }
  0xb6   :  { %vm534_vm0 = vcmp.lt.s32.totalorder %v2654_v36, 2  ;;  %v541_v3 = vsel %vm533_vm14, %v2684_v1, %v2686_v57  ;;  %v543_v6 = vsel %vm535_vm15, %v2688_v58, %v542_v4  ;;  %v399_v7 = vshrl.u32 %v394_v60, 16 }
  0xb7   :  { %v421_v8 = vshrl.u32 %v390_v59, 16  ;;  %v545_v9 = vsel %vm533_vm14, %v2686_v57, %v2688_v58  ;;  %v547_v10 = vsel %vm535_vm15, %v529_v47, %v546_v62  ;;  %v2715_v11 = vshll.u32 %v509_v61, 8 }
  0xb8   :  { %v544_v12 = vsel %vm534_vm0, %v541_v3, %v543_v6  ;;  %v397_v13 = vshrl.u32 %v2682_v55, 16  ;;  %v398_v14 = vand.u32 65535, %v394_v60  ;;  %v548_v18 = vsel %vm534_vm0, %v545_v9, %v547_v10 }
  0xb9   :  { %v2722_v19 = vmul.u32 %v399_v7, %v396_v63  ;;  %v420_v20 = vand.u32 65535, %v390_v59  ;;  %v423_v21 = vmul.u32 %v421_v8, %v396_v63  ;;  %v550_v22 = vand.u32 65535, %v2715_v11 }
  0xba   :  { %v575_v23 = vshrl.u32 %v544_v12, 16  ;;  %v553_v24 = vshrl.u32 %v548_v18, 16  ;;  %v400_v25 = vmul.u32 %v398_v14, %v396_v63  ;;  %v2725_v28 = vmul.u32 %v398_v14, %v397_v13 }
  0xbb   :  { %v404_v26 = vshll.u32 %v2722_v19, 16  ;;  %v422_v29 = vmul.u32 %v420_v20, %v396_v63  ;;  %v2728_v34 = vmul.u32 %v420_v20, %v397_v13  ;;  %v426_v35 = vshll.u32 %v423_v21, 16 }
  0xbc   :  { %v551_v37 = vshrl.u32 %v2715_v11, 16  ;;  %v574_v38 = vand.u32 65535, %v544_v12  ;;  %v577_v39 = vmul.u32 %v575_v23, %v550_v22  ;;  %v552_v40 = vand.u32 65535, %v548_v18 }
  0xbd   :  { %v2731_v41 = vmul.u32 %v553_v24, %v550_v22  ;;  %v406_v42 = vshll.u32 %v2725_v28, 16  ;;  %vm408_vm1 = vc.u32 %v400_v25, %v404_v26  ;;  %v428_v43 = vshll.u32 %v2728_v34, 16 }
  0xbe   :  { %vm430_vm2 = vc.u32 %v422_v29, %v426_v35  ;;  %v432_v44 = vadd.s32 %v426_v35, %v422_v29  ;;  %v410_v45 = vadd.s32 %v404_v26, %v400_v25  ;;  %v576_v46 = vmul.u32 %v574_v38, %v550_v22 }
  0xbf   :  { %v2735_v47 = vmul.u32 %v574_v38, %v551_v37  ;;  %v580_v48 = vshll.u32 %v577_v39, 16  ;;  %v425_v49 = vmul.u32 %v421_v8, %v397_v13  ;;  %v554_v50 = vmul.u32 %v552_v40, %v550_v22 }
  0xc0   :  { %v556_v51 = vmul.u32 %v552_v40, %v551_v37  ;;  %v558_v52 = vshll.u32 %v2731_v41, 16  ;;  %v403_v54 = vmul.u32 %v399_v7, %v397_v13  ;;  %v431_v4 = vsel %vm430_vm2, 1, %v2527_v0 }
  0xc1   :  { %v409_v59 = vsel %vm408_vm1, 1, %v2527_v0  ;;  %vm434_vm3 = vc.u32 %v432_v44, %v428_v43  ;;  %vm412_vm4 = vc.u32 %v410_v45, %v406_v42  ;;  %v582_v60 = vshll.u32 %v2735_v47, 16 }
  0xc2   :  { %vm584_vm5 = vc.u32 %v576_v46, %v580_v48  ;;  %v586_v61 = vadd.s32 %v580_v48, %v576_v46  ;;  %v560_v62 = vshll.u32 %v556_v51, 16  ;;  %vm562_vm6 = vc.u32 %v554_v50, %v558_v52 }
  0xc3   :  { %v564_v63 = vadd.s32 %v558_v52, %v554_v50  ;;  %v433_v3 = vadd.s32 %v431_v4, %v425_v49  ;;  %v411_v6 = vadd.s32 %v409_v59, %v403_v54  ;;  %v579_v8 = vmul.u32 %v575_v23, %v551_v37  ;;  %v72_v49 = vld [vmem:[#allocation7 + $0x2] sm:$0x7] }
  0xc4   :  { %v435_v9 = vsel %vm434_vm3, 1, %v2527_v0  ;;  %v557_v10 = vmul.u32 %v553_v24, %v551_v37  ;;  %v413_v7 = vsel %vm412_vm4, 1, %v2527_v0  ;;  %v585_v12 = vsel %vm584_vm5, 1, %v2527_v0 }
  0xc5   :  { %v563_v13 = vsel %vm562_vm6, 1, %v2527_v0  ;;  %vm588_vm7 = vc.u32 %v586_v61, %v582_v60  ;;  %v427_v14 = vshrl.u32 %v423_v21, 16  ;;  %v437_v18 = vadd.s32 %v435_v9, %v433_v3 }
  0xc6   :  { %vm566_vm8 = vc.u32 %v564_v63, %v560_v62  ;;  %v405_v20 = vshrl.u32 %v2722_v19, 16  ;;  %v415_v22 = vadd.s32 %v413_v7, %v411_v6  ;;  %v587_v25 = vadd.s32 %v585_v12, %v579_v8 }
  0xc7   :  { %v565_v26 = vadd.s32 %v563_v13, %v557_v10  ;;  %v589_v23 = vsel %vm588_vm7, 1, %v2527_v0  ;;  %v567_v29 = vsel %vm566_vm8, 1, %v2527_v0  ;;  %v363_v24 = vshrl.u32 %v2532_v17, %v2629_v5 }
  0xc8   :  { %v384_v35 = vsel %vm382_vm10, %v2650_v33, 2102212464  ;;  %v429_v21 = vshrl.u32 %v2728_v34, 16  ;;  %v438_v37 = vadd.s32 %v437_v18, %v427_v14  ;;  %v407_v38 = vshrl.u32 %v2725_v28, 16 }
  0xc9   :  { %v416_v19 = vadd.s32 %v415_v22, %v405_v20  ;;  %v581_v40 = vshrl.u32 %v577_v39, 16  ;;  %v591_v42 = vadd.s32 %v589_v23, %v587_v25  ;;  %v559_v45 = vshrl.u32 %v2731_v41, 16 }
  0xca   :  { %v569_v46 = vadd.s32 %v567_v29, %v565_v26  ;;  %v383_v0 = vsel %vm379_vm9, %v363_v24, %v2643_v30  ;;  %v385_v5 = vsel %vm381_vm11, %v2648_v32, %v384_v35  ;;  %v439_v33 = vadd.s32 %v438_v37, %v429_v21 }
  0xcb   :  { %v2762_v48 = vadd.s32 %v416_v19, %v407_v38  ;;  %v2764_v34 = vadd.s32 %v432_v44, %v428_v43  ;;  %v583_v28 = vshrl.u32 %v2735_v47, 16  ;;  %v592_v39 = vadd.s32 %v591_v42, %v581_v40 }
  0xcc   :  { %v517_v41 = vshrl.u32 %v2532_v17, %v2641_v27  ;;  %v561_v50 = vshrl.u32 %v556_v51, 16  ;;  %v570_v52 = vadd.s32 %v569_v46, %v559_v45  ;;  %v538_v30 = vsel %vm536_vm13, %v2688_v58, 2102212464 }
  0xcd   :  { %v386_v32 = vsel %vm380_vm12, %v383_v0, %v385_v5  ;;  %v443_v54 = vadd.s32 1, %v439_v33  ;;  %v155_v4 = vperm.slane %v72_v49, 1  ;;  %vm442_vm9 = vc.u32 %v2762_v48, %v2764_v34 }
  0xce   :  { %v593_v43 = vadd.s32 %v592_v39, %v583_v28  ;;  %v537_v17 = vsel %vm533_vm14, %v517_v41, %v2684_v1  ;;  %v539_v27 = vsel %vm535_vm15, %v2686_v57, %v538_v30  ;;  %v2782_v44 = vadd.s32 %v570_v52, %v561_v50 }
  0xcf   :  { %v2784_v58 = vadd.s32 %v586_v61, %v582_v60  ;;  %v440_v16 = vmul.u32 %v2682_v55, %v386_v32  ;;  %v444_v51 = vsel %vm442_vm9, %v443_v54, %v439_v33  ;;  %v540_v59 = vsel %vm534_vm0, %v537_v17, %v539_v27 }
  0xd0   :  { %v597_v63 = vadd.s32 1, %v593_v43  ;;  %v594_v55 = vmul.u32 %v2715_v11, %v540_v59  ;;  %v154_v60 = vperm.slane %v72_v49, 0  ;;  %v156_v6 = vperm.slane %v72_v49, 2 }
  0xd1   :  { %vm596_vm10 = vc.u32 %v2782_v44, %v2784_v58  ;;  %v445_v1 = vadd.s32 %v444_v51, %v440_v16  ;;  %v441_v50 = vadd.s32 %v2764_v34, %v2762_v48  ;;  %v595_v17 = vadd.s32 %v2784_v58, %v2782_v44 }
  0xd2   :  { %v598_v61 = vsel %vm596_vm10, %v597_v63, %v593_v43  ;;  %vm349_vm15 = vcmp.lt.s32.totalorder %v2622_v53, 0  ;;  %vm2828_vm0 = vcmp.le.f32.partialorder %v347_v2, 0.7853982  ;;  %vm503_vm1 = vcmp.lt.s32.totalorder %v2625_v56, 0 }
  0xd3   :  { %v446_v3 = vadd.s32 536870912, %v445_v1  ;;  %v599_v9 = vadd.s32 %v598_v61, %v594_v55  ;;  %vm2840_vm2 = vcmp.le.f32.partialorder %v501_v31, 0.7853982  ;;  %vm981_vm8 = vcmask 261120  }
  0xd4   :  { %vm984_vm10 = vcmask 523264  }
  0xd5   :  { %v2804_v12 = vshrl.u32 %v446_v3, 30  ;;  %v600_v13 = vadd.s32 536870912, %v599_v9 }
  0xd7   :  { %v448_v20 = vshll.u32 %v2804_v12, 30  ;;  %v2807_v26 = vshrl.u32 %v600_v13, 30 }
  0xd9   :  { %v449_v24 = vsub.s32 %v445_v1, %v448_v20  ;;  %v602_v37 = vshll.u32 %v2807_v26, 30 }
  0xdb   :  { %v451_v19 = vsub.s32 0, %v449_v24  ;;  %vm450_vm11 = vcmp.lt.s32.totalorder %v449_v24, 0  ;;  %v603_v40 = vsub.s32 %v599_v9, %v602_v37 }
  0xdd   :  { %v452_v42 = vsel %vm450_vm11, %v451_v19, %v449_v24  ;;  %v605_v45 = vsub.s32 0, %v603_v40  ;;  %vm604_vm12 = vcmp.lt.s32.totalorder %v603_v40, 0  ;;  %vm987_vm11 = vcmask 785408  }
  0xde   :  { %v453_v46 = vclz %v452_v42 }
  0xdf   :  { %v606_v0 = vsel %vm604_vm12, %v605_v45, %v603_v40 }
  0xe0   :  { %v2000_v5 = vadd.s32 4294967294, %v453_v46  ;;  %v607_v33 = vclz %v606_v0  ;;  %v471_v46 = vsub.s32 4, %v2804_v12 }
  0xe2   :  { %vm2001_vm13 = vcmp.lt.s32.totalorder %v2000_v5, 0  ;;  %v2003_v28 = vadd.s32 4294967294, %v607_v33 }
  0xe3   :  { %v456_v39 = vsel %vm2001_vm13, 0, %v2000_v5 }
  0xe4   :  { %vm2004_vm14 = vcmp.lt.s32.totalorder %v2003_v28, 0  ;;  %v461_v41 = vsub.s32 4294967266, %v456_v39  ;;  %v457_v52 = vsub.s32 32, %v456_v39  ;;  %v458_v54 = vshll.u32 %v449_v24, %v456_v39 }
  0xe5   :  { %v610_v49 = vsel %vm2004_vm14, 0, %v2003_v28  ;;  %v472_v39 = vsel %vm349_vm15, %v471_v46, %v2804_v12  ;;  %vm490_vm14 = vweird.f32 %v2622_v53 }
  0xe6   :  { %v462_v30 = vadd.s32 127, %v461_v41  ;;  %v615_v32 = vsub.s32 4294967266, %v610_v49  ;;  %v611_v27 = vsub.s32 32, %v610_v49  ;;  %v612_v59 = vshll.u32 %v603_v40, %v610_v49 }
  0xe8   :  { %v463_v43 = vshll.u32 %v462_v30, 23  ;;  %v616_v16 = vadd.s32 127, %v615_v32  ;;  %v613_v63 = vshrl.u32 %v595_v17, %v611_v27 }
  0xea   :  { %v464_v51 = vor.u32 4788187, %v463_v43  ;;  %v617_v1 = vshll.u32 %v616_v16, 23 }
  0xec   :  { %v465_v55 = vand.u32 2147483647, %v464_v51  ;;  %v618_v48 = vor.u32 4788187, %v617_v1 }
  0xee   :  { %v619_v61 = vand.u32 2147483647, %v618_v48 }
 0x128   :  { %v311_v47 = vpop.f32.mrf.mxu1  ;;  %v297_v57 = vpop.f32.mrf.mxu0 }
 0x129   :  { %v2789_v62 = vadd.f32 %v311_v47, %v155_v4  ;;  %v2797_v10 = vadd.f32 %v297_v57, %v154_v60 }
 0x12b   :  { %1008 = vrot.lane.b32.xlu0 %v2789_v62, %s2525_s3  ;;  %1002 = vrot.lane.b32.xlu2 %v2789_v62, %s2535_s1 }
 0x12f   :  { %v325_v36 = vpop.f32.mrf.mxu2 }
 0x130   :  { %v313_v8 = vpop.f32.mrf.mxu1  ;;  %v326_v11 = vadd.f32 %v325_v36, %v156_v6  ;;  %v299_v14 = vpop.f32.mrf.mxu0 }
 0x131   :  { %v2799_v7 = vadd.f32 %v313_v8, %v155_v4  ;;  %v2809_v23 = vadd.f32 %v299_v14, %v154_v60  ;;  %v459_v4 = vshrl.u32 %v441_v50, %v457_v52  ;;  %v614_v60 = vor.u32 %v613_v63, %v612_v59 }
 0x132   :  { %v1026_v22 = vpack.c.bf16 %v326_v11, %v326_v11  ;;  %v474_v50 = vsel %vm2828_vm0, 0, %v472_v39  ;;  %v625_v52 = vsub.s32 4, %v2807_v26 }
 0x133   :  { %1010 = vrot.lane.b32.xlu1 %v2799_v7, %s2525_s3  ;;  %969 = vrot.lane.b32.xlu2 %v2797_v10, %s2535_s1  ;;  %v460_v47 = vor.u32 %v459_v4, %v458_v54  ;;  %v621_v36 = vcvt.s32.f32 %v614_v60  ;;  %v799_v4 = vadd.s32 3, %v474_v50  ;;  %v491_v27 = vand.u32 3, %v474_v50 }
 0x134   :  { %v1119_v35 = vunpack.c.l.b16 %v1026_v22  ;;  %v626_v16 = vsel %vm503_vm1, %v625_v52, %v2807_v26 }
 0x135   :  { %v467_v57 = vcvt.s32.f32 %v460_v47  ;;  %v800_v51 = vand.u32 3, %v799_v4  ;;  %vm493_vm3 = vcmp.eq.s32.totalorder %v491_v27, 0  ;;  %v628_v1 = vsel %vm2840_vm2, 0, %v626_v16 }
 0x136   :  { %vm496_vm4 = vcmp.eq.s32.totalorder %v491_v27, 2  ;;  %v954_v60 = vadd.s32 3, %v628_v1  ;;  %v645_v48 = vand.u32 3, %v628_v1  ;;  %vm492_vm7 = vcmp.lt.s32.totalorder %v491_v27, 2 }
 0x137   :  { %v327_v18 = vpop.f32.mrf.mxu2  ;;  %v468_v34 = vmul.f32 %v467_v57, %v465_v55  ;;  %vm802_vm5 = vcmp.eq.s32.totalorder %v800_v51, 0  ;;  %vm805_vm6 = vcmp.eq.s32.totalorder %v800_v51, 2  ;;  %vm801_vm9 = vcmp.lt.s32.totalorder %v800_v51, 2 }
 0x138   :  { %v328_v25 = vadd.f32 %v327_v18, %v156_v6  ;;  %v622_v6 = vmul.f32 %v621_v36, %v619_v61  ;;  %vm647_vm12 = vcmp.eq.s32.totalorder %v645_v48, 0  ;;  %vm650_vm13 = vcmp.eq.s32.totalorder %v645_v48, 2 }
 0x139   :  { %v469_v3 = vxor.u32 2147483648, %v468_v34 }
 0x13a   :  { %v1027_v29 = vpack.c.bf16 %v328_v25, %v328_v25  ;;  %v623_v8 = vxor.u32 2147483648, %v622_v6 }
 0x13b   :  { %971 = vrot.lane.b32.xlu1 %v2809_v23, %s2535_s1  ;;  %1004 = vrot.lane.b32.xlu2 %v2799_v7, %s2535_s1  ;;  %v470_v58 = vsel %vm349_vm15, %v469_v3, %v468_v34 }
 0x13c   :  { %v1120_v21 = vunpack.c.l.b16 %v1027_v29  ;;  %v473_v9 = vsel %vm2828_vm0, %v2622_v53, %v470_v58  ;;  %v624_v2 = vsel %vm503_vm1, %v623_v8, %v622_v6  ;;  %v955_v6 = vand.u32 3, %v954_v60 }
 0x13d   :  { %v475_v13 = vmul.f32 %v473_v9, %v473_v9  ;;  %v627_v14 = vsel %vm2840_vm2, %v2625_v56, %v624_v2  ;;  %vm646_vm1 = vcmp.lt.s32.totalorder %v645_v48, 2 }
 0x13e   :  { %v2814_v38 = vpack.c.b16 %v1120_v21, %v1119_v35  ;;  %v629_v20 = vmul.f32 %v627_v14, %v627_v14  ;;  %vm957_vm15 = vcmp.eq.s32.totalorder %v955_v6, 0  ;;  %vm960_vm0 = vcmp.eq.s32.totalorder %v955_v6, 2 }
 0x13f   :  { %v483_v18 = vmul.f32 -0.00019511016, %v475_v13  ;;  %v476_v22 = vmul.f32 -0.001358992, %v475_v13  ;;  %vm956_vm2 = vcmp.lt.s32.totalorder %v955_v6, 2 }
 0x140   :  { %1133 = vmatpush.bf16.msra.mxu3 %v2814_v38  ;;  %v637_v29 = vmul.f32 -0.00019511016, %v629_v20  ;;  %v630_v21 = vmul.f32 -0.001358992, %v629_v20 }
 0x141   :  { %v484_v25 = vadd.f32 0.008332121, %v483_v18  ;;  %v477_v24 = vadd.f32 0.041655596, %v476_v22 }
 0x142   :  { %v638_v31 = vadd.f32 0.008332121, %v637_v29  ;;  %v631_v42 = vadd.f32 0.041655596, %v630_v21 }
 0x143   :  { %977 = vrot.lane.b32.xlu1 %v2809_v23, %s2525_s3  ;;  %975 = vrot.lane.b32.xlu2 %v2797_v10, %s2525_s3  ;;  %v485_v35 = vmul.f32 %v484_v25, %v475_v13  ;;  %v478_v37 = vmul.f32 %v477_v24, %v475_v13 }
 0x144   :  { %v639_v45 = vmul.f32 %v638_v31, %v629_v20  ;;  %v632_v33 = vmul.f32 %v631_v42, %v629_v20 }
 0x145   :  { %v486_v19 = vadd.f32 -0.16666654, %v485_v35  ;;  %v479_v0 = vadd.f32 -0.4999988, %v478_v37 }
 0x146   :  { %v640_v28 = vadd.f32 -0.16666654, %v639_v45  ;;  %v633_v30 = vadd.f32 -0.4999988, %v632_v33 }
 0x147   :  { %v487_v5 = vmul.f32 %v486_v19, %v475_v13  ;;  %v480_v41 = vmul.f32 %v479_v0, %v475_v13 }
 0x148   :  { %v641_v32 = vmul.f32 %v640_v28, %v629_v20  ;;  %v634_v12 = vmul.f32 %v633_v30, %v629_v20 }
 0x149   :  { %v488_v49 = vadd.f32 1.0, %v487_v5  ;;  %v481_v43 = vadd.f32 1.0, %v480_v41 }
 0x14a   :  { %v642_v47 = vadd.f32 1.0, %v641_v32  ;;  %v635_v55 = vadd.f32 1.0, %v634_v12 }
 0x14b   :  { %v489_v17 = vmul.f32 %v488_v49, %v473_v9  ;;  %v497_v63 = vxor.u32 2147483648, %v481_v43 }
 0x14c   :  { %v643_v57 = vmul.f32 %v642_v47, %v627_v14  ;;  %v651_v3 = vxor.u32 2147483648, %v635_v55 }
 0x14d   :  { %v494_v59 = vxor.u32 2147483648, %v489_v17  ;;  %v498_v61 = vsel %vm496_vm4, %v497_v63, %v489_v17  ;;  %v807_v58 = vsel %vm805_vm6, %v497_v63, %v489_v17 }
 0x14e   :  { %v648_v36 = vxor.u32 2147483648, %v643_v57  ;;  %v652_v20 = vsel %vm650_vm13, %v651_v3, %v643_v57  ;;  %v962_v24 = vsel %vm960_vm0, %v651_v3, %v643_v57 }
 0x14f   :  { %v495_v34 = vsel %vm493_vm3, %v481_v43, %v494_v59  ;;  %v804_v44 = vsel %vm802_vm5, %v481_v43, %v494_v59  ;;  %vm644_vm3 = vweird.f32 %v2625_v56  ;;  %vm1067_vm5 = vcmask 130048  }
 0x150   :  { %v499_v9 = vsel %vm492_vm7, %v495_v34, %v498_v61  ;;  %v808_v2 = vsel %vm801_vm9, %v804_v44, %v807_v58  ;;  %v649_v18 = vsel %vm647_vm12, %v635_v55, %v648_v36  ;;  %v959_v29 = vsel %vm957_vm15, %v635_v55, %v648_v36 }
 0x151   :  { %v500_v22 = vsel %vm490_vm14, nan, %v499_v9  ;;  %v809_v25 = vsel %vm490_vm14, nan, %v808_v2  ;;  %v653_v35 = vsel %vm646_vm1, %v649_v18, %v652_v20  ;;  %v963_v37 = vsel %vm956_vm2, %v959_v29, %v962_v24 }
 0x152   :  { %v998_v21 = vmul.f32 %v500_v22, %v2789_v62  ;;  %v964_v5 = vsel %vm644_vm3, nan, %v963_v37  ;;  %v965_v17 = vmul.f32 %v500_v22, %v2797_v10  ;;  %v1028_v61 = vlaneseq }
 0x154   :  { %v2888_v36 = vand.u32 127, %v1028_v61 }
 0x185   :  { %v1003_v40 = vpop.permute.xlu2 %1002 }
 0x18d   :  { %v2856_v54 = vpop.permute.xlu2 %969 }
 0x195   :  { %v1005_v26 = vpop.permute.xlu2 %1004 }
 0x19d   :  { %v1009_v8 = vpop.permute.xlu0 %1008  ;;  %v976_v31 = vpop.permute.xlu2 %975 }
 0x19e   :  { %v1014_v11 = vsel %vm981_vm8, %v1003_v40, %v1009_v8  ;;  %v982_v0 = vsel %vm981_vm8, %v2856_v54, %v976_v31 }
 0x19f   :  { %v1016_v13 = vsel %vm984_vm10, %v1014_v11, %v1003_v40  ;;  %v654_v40 = vsel %vm644_vm3, nan, %v653_v35  ;;  %v985_v62 = vsel %vm984_vm10, %v982_v0, %v2856_v54 }
 0x1a0   :  { %v1018_v14 = vsel %vm987_vm11, %v1016_v13, %v1009_v8  ;;  %v999_v56 = vmul.f32 %v654_v40, %v2799_v7  ;;  %v988_v52 = vsel %vm987_vm11, %v985_v62, %v976_v31  ;;  %v966_v59 = vmul.f32 %v654_v40, %v2809_v23 }
 0x1a1   :  { %v1020_v53 = vmul.f32 %v1018_v14, %v809_v25  ;;  %v990_v4 = vmul.f32 %v988_v52, %v809_v25 }
 0x1a3   :  { %v1022_v45 = vadd.f32 %v1020_v53, %v998_v21  ;;  %v992_v7 = vadd.f32 %v990_v4, %v965_v17 }
 0x1a5   :  { %v1011_v19 = vpop.permute.xlu1 %1010  ;;  %v1024_v41 = vpack.c.bf16 %v1022_v45, %v1022_v45  ;;  %v994_v51 = vmul.f32 0.125, %v992_v7 }
 0x1a6   :  { %v1015_v42 = vsel %vm981_vm8, %v1005_v26, %v1011_v19 }
 0x1a7   :  { %v1017_v46 = vsel %vm984_vm10, %v1015_v42, %v1005_v26  ;;  %v1042_v30 = vunpack.c.l.b16 %v1024_v41  ;;  %v996_v55 = vpack.c.bf16 %v994_v51, %v994_v51  ;;  %v2886_v26 = vshrl.u32 %v1028_v61, 7 }
 0x1a8   :  { %v1019_v33 = vsel %vm987_vm11, %v1017_v46, %v1011_v19 }
 0x1a9   :  { %v1021_v28 = vmul.f32 %v1019_v33, %v964_v5  ;;  %v1037_v10 = vunpack.c.l.b16 %v996_v55  ;;  %vm1033_vm4 = vcmp.le.s32.totalorder %v2888_v36, %v2886_v26  ;;  %v2897_v44 = vadd.s32 8, %v2886_v26 }
 0x1ab   :  { %v1023_v39 = vadd.f32 %v1021_v28, %v999_v56  ;;  %vm1034_vm6 = vcmp.le.s32.totalorder %v2888_v36, %v2897_v44 }
 0x1ad   :  { %v972_v49 = vpop.permute.xlu1 %971  ;;  %v1025_v50 = vpack.c.bf16 %v1023_v39, %v1023_v39 }
 0x1af   :  { %v1043_v32 = vunpack.c.l.b16 %v1025_v50 }
 0x1b1   :  { %v1044_v43 = vpack.c.b16 %v1043_v32, %v1042_v30 }
 0x1b3   :  { %v1049_v27 = vsel %vm984_vm10, %v1044_v43, 0 }
 0x1b4   :  { %1058 = vmatpush.bf16.xpose.msrb.mxu0 %v1049_v27 }
 0x1b5   :  { %v978_v16 = vpop.permute.xlu1 %977 }
 0x1b6   :  { %v983_v12 = vsel %vm981_vm8, %v972_v49, %v978_v16 }
 0x1b7   :  { %v986_v54 = vsel %vm984_vm10, %v983_v12, %v972_v49 }
 0x1b8   :  { %v989_v47 = vsel %vm987_vm11, %v986_v54, %v978_v16 }
 0x1b9   :  { %v991_v63 = vmul.f32 %v989_v47, %v964_v5 }
 0x1bb   :  { %v993_v1 = vadd.f32 %v991_v63, %v966_v59 }
 0x1bd   :  { %v995_v57 = vmul.f32 0.125, %v993_v1 }
 0x1bf   :  { %v997_v60 = vpack.c.bf16 %v995_v57, %v995_v57 }
 0x1c1   :  { %v1038_v48 = vunpack.c.l.b16 %v997_v60 }
 0x1c3   :  { %v1039_v34 = vpack.c.b16 %v1038_v48, %v1037_v10 }
 0x1c5   :  { %2011 = vmatmul.msk.bf16.vlgmr.msrb.gmra.mxu0 %vm984_vm10, %v1039_v34 }
 0x242   :  { %v1060_v23 = vpop.f32.mrf.mxu0 }
 0x243   :  { %v1065_v3 = vsel %vm1033_vm4, %v1060_v23, -inf }
 0x244   :  { %v1068_v6 = vsel %vm1067_vm5, %v1065_v3, -inf }
 0x245   :  { %1069 = vmax.xlane.f32.xlu2 %v1068_v6 }
 0x24a   :  { %v1062_v58 = vpop.f32.mrf.mxu0 }
 0x24b   :  { %v1066_v8 = vsel %vm1034_vm6, %v1062_v58, -inf }
 0x24c   :  { %v1071_v9 = vsel %vm1067_vm5, %v1066_v8, -inf }
 0x24d   :  { %1072 = vmax.xlane.f32.xlu0 %v1071_v9 }
 0x261   :  { %1144 = vrot.lane.b32.xlu0 %v1044_v43, %s2521_s29 }
 0x2b8   :  { %v1070_v11 = vpop.xlane.xlu2 %1069 }
 0x2b9   :  { %v1074_v2 = vsub.f32 %v1065_v3, %v1070_v11 }
 0x2bb   :  { %v1076_v13 = vmul.f32 1.442695, %v1074_v2 }
 0x2bd   :  { %2354 = vpow2.f32 %v1076_v13 }
 0x2c0   :  { %v1073_v14 = vpop.xlane.xlu0 %1072 }
 0x2c1   :  { %v1075_v18 = vsub.f32 %v1066_v8, %v1073_v14 }
 0x2c3   :  { %v2355_v20 = vpop.eup %2354  ;;  %v1078_v22 = vmul.f32 1.442695, %v1075_v18 }
 0x2c4   :  { %v1080_v25 = vsel %vm1067_vm5, %v2355_v20, 0.0 }
 0x2c5   :  { %2356 = vpow2.f32 %v1078_v22  ;;  %1081 = vadd.xlane.f32.xlu1 %v1080_v25 }
 0x2cb   :  { %v2357_v29 = vpop.eup %2356 }
 0x2cc   :  { %v1083_v24 = vsel %vm1067_vm5, %v2357_v29, 0.0 }
 0x2cd   :  { %1084 = vadd.xlane.f32.xlu2 %v1083_v24 }
 0x2d3   :  { %v1145_v53 = vpop.permute.xlu0 %1144 }
 0x2d4   :  { %v1150_v35 = vsel %vm984_vm10, %v1145_v53, 0 }
 0x2d5   :  { %1159 = vmatpush.bf16.xpose.msrb.mxu3 %v1150_v35 }
 0x2e5   :  { %1142 = vrot.lane.b32.xlu2 %v1039_v34, %s2521_s29 }
 0x2ed   :  { %1217 = vrot.lane.b32.xlu2 %v2814_v38, %s2521_s29 }
 0x338   :  { %v1082_v21 = vpop.xlane.xlu1 %1081 }
 0x339   :  { %2358 = vrcp.f32 %v1082_v21  ;;  %v1097_v33 = vand.u32 2147483648, %v1082_v21  ;;  %vm1091_vm8 = vweird.f32 %v1082_v21  ;;  %v1095_v56 = vand.u32 2147483647, %v1082_v21 }
 0x33b   :  { %v1098_v49 = vor.u32 1.1754944e-38, %v1097_v33  ;;  %vm1096_vm12 = vcmp.eq.f32.partialorder %v1095_v56, 8.507059e+37 }
 0x33f   :  { %v2359_v31 = vpop.eup %2358 }
 0x340   :  { %v1087_v37 = vmul.f32 %v2359_v31, %v1082_v21  ;;  %v1085_v19 = vpop.xlane.xlu2 %1084  ;;  %vm1092_vm7 = vweird.f32 %v2359_v31 }
 0x341   :  { %2360 = vrcp.f32 %v1085_v19  ;;  %vm1093_vm9 = vmor %vm1091_vm8, %vm1092_vm7  ;;  %v1112_v62 = vand.u32 2147483648, %v1085_v19  ;;  %v1110_v39 = vand.u32 2147483647, %v1085_v19  ;;  %vm1106_vm13 = vweird.f32 %v1085_v19 }
 0x342   :  { %v1088_v40 = vsub.f32 1.0, %v1087_v37 }
 0x343   :  { %v1113_v52 = vor.u32 1.1754944e-38, %v1112_v62  ;;  %vm1111_vm15 = vcmp.eq.f32.partialorder %v1110_v39, 8.507059e+37  ;;  %v2274_v62 = vld [vmem:[#allocation2 + $0x1e8] sm:$0xf0] }
 0x344   :  { %v1089_v42 = vmul.f32 %v2359_v31, %v1088_v40 }
 0x346   :  { %v1090_v46 = vadd.f32 %v2359_v31, %v1089_v42 }
 0x347   :  { %v2361_v45 = vpop.eup %2360 }
 0x348   :  { %v1102_v0 = vmul.f32 %v2361_v45, %v1085_v19  ;;  %v1143_v5 = vpop.permute.xlu2 %1142  ;;  %vm1107_vm11 = vweird.f32 %v2361_v45  ;;  %v1094_v41 = vsel %vm1093_vm9, %v2359_v31, %v1090_v46 }
 0x349   :  { %vm1108_vm14 = vmor %vm1106_vm13, %vm1107_vm11  ;;  %v1099_v30 = vsel %vm1096_vm12, %v1098_v49, %v1094_v41  ;;  %v2273_v41 = vld [vmem:[#allocation2 + $0x1a8] sm:$0xf0] }
 0x34a   :  { %v1103_v28 = vsub.f32 1.0, %v1102_v0  ;;  %v1100_v17 = vmul.f32 %v2355_v20, %v1099_v30 }
 0x34c   :  { %v1104_v38 = vmul.f32 %v2361_v45, %v1103_v28  ;;  %v2045_v28 = vld [vmem:[#allocation2 + $0x1cc] sm:$0xf] }
 0x34d   :  { %v2046_v39 = vor.u32 %v2274_v62, %v2045_v28  ;;  %v2155_v28 = vld [vmem:[#allocation2 + $0x1b8] sm:$0xf0] }
 0x34e   :  { %v1105_v50 = vadd.f32 %v2361_v45, %v1104_v38  ;;  %v2041_v38 = vld [vmem:[#allocation2 + $0x18c] sm:$0xf] }
 0x34f   :  { %1319 = vmatpush.bf16.msrb.mxu1 %v2046_v39  ;;  %v2042_v49 = vor.u32 %v2273_v41, %v2041_v38  ;;  %v2129_v38 = vld [vmem:[#allocation2 + $0x150] sm:$0xf]  ;;  %v2295_v41 = vld [vmem:[#allocation2 + $0x154] sm:$0xf] }
 0x350   :  { %v1218_v32 = vpop.permute.xlu2 %1217  ;;  %v1109_v4 = vsel %vm1108_vm14, %v2361_v45, %v1105_v50  ;;  %v2037_v50 = vld [vmem:[#allocation2 + $0x14c] sm:$0xf]  ;;  %v2297_v39 = vld [vmem:[#allocation2 + $0x16c] sm:$0xf0] }
 0x351   :  { %1230 = vmatpush.bf16.msra.mxu0 %v1218_v32  ;;  %v1114_v43 = vsel %vm1111_vm15, %v1113_v52, %v1109_v4  ;;  %v2272_v52 = vld [vmem:[#allocation2 + $0x168] sm:$0xf0] }
 0x352   :  { %v1115_v27 = vmul.f32 %v2357_v29, %v1114_v43  ;;  %v2038_v30 = vor.u32 %v2272_v52, %v2037_v50  ;;  %v2033_v32 = vld [vmem:[#allocation2 + $0x10c] sm:$0xf]  ;;  %v2131_v50 = vld [vmem:[#allocation2 + $0x170] sm:$0xf0]  ;;  %v2137_v52 = vld [vmem:[#allocation2 + $0x158] sm:$0xf] }
 0x353   :  { %1320 = vmatpush.bf16.msrb.mxu1 %v2042_v49  ;;  %v2271_v4 = vld [vmem:[#allocation2 + $0x128] sm:$0xf0]  ;;  %v2130_v49 = vor.u32 %v2297_v39, %v2129_v38  ;;  %v2277_v38 = vld [vmem:[#allocation2 + $0x2c] sm:$0xf0]  ;;  %v2275_v39 = vld [vmem:[#allocation2 + $0x14] sm:$0xf] }
 0x354   :  { %v1116_v7 = vpack.c.bf16 %v1115_v27, %v1100_v17  ;;  %v2034_v43 = vor.u32 %v2271_v4, %v2033_v32  ;;  %v2029_v17 = vld [vmem:[#allocation2 + $0xcc] sm:$0xf]  ;;  %v2134_v32 = vor.u32 %v2295_v41, %v2131_v50  ;;  %v2051_v50 = vld [vmem:[#allocation2 + $0x30] sm:$0xf0] }
 0x355   :  { %v2270_v27 = vld [vmem:[#allocation2 + $0xe8] sm:$0xf0] }
 0x356   :  { %2012 = vmatmul.msk.bf16.vlgmr.msra.gmra.mxu3 %vm1067_vm5, %v1116_v7  ;;  %v2030_v7 = vor.u32 %v2270_v27, %v2029_v17  ;;  %v2139_v17 = vld [vmem:[#allocation2 + $0x178] sm:$0xf0] }
 0x357   :  { %1321 = vmatpush.bf16.msrb.mxu1 %v2038_v30  ;;  %v2298_v30 = vld [vmem:[#allocation2 + $0x174] sm:$0xf0] }
 0x358   :  { %v2138_v4 = vor.u32 %v2298_v30, %v2137_v52  ;;  %v2057_v52 = vld [vmem:[#allocation2 + $0x18] sm:$0xf] }
 0x359   :  { %v2278_v30 = vld [vmem:[#allocation2 + $0x34] sm:$0xf0] }
 0x35b   :  { %1322 = vmatpush.bf16.msrb.mxu1 %v2034_v43  ;;  %v2296_v43 = vld [vmem:[#allocation2 + $0x15c] sm:$0xf] }
 0x35c   :  { %v2142_v27 = vor.u32 %v2296_v43, %v2139_v17  ;;  %v2058_v43 = vor.u32 %v2278_v30, %v2057_v52  ;;  %v2276_v17 = vld [vmem:[#allocation2 + $0x1c] sm:$0xf] }
 0x35f   :  { %1323 = vmatpush.bf16.msrb.mxu1 %v2030_v7  ;;  %v2113_v7 = vld [vmem:[#allocation2 + $0x110] sm:$0xf] }
 0x366   :  { %2013 = vmatmul.msk.bf16.vlgmr.msrb.gmra.mxu3 %vm984_vm10, %v1143_v5 }
 0x3d9   :  { %v1135_v16 = vpop.f32.mrf.mxu3 }
 0x3da   :  { %v1140_v12 = vpack.c.bf16 %v1135_v16, %v1135_v16  ;;  %v2025_v16 = vld [vmem:[#allocation2 + $0x8c] sm:$0xf] }
 0x3dc   :  { %v2914_v51 = vunpack.c.l.b16 %v1140_v12  ;;  %v2269_v12 = vld [vmem:[#allocation2 + $0xa8] sm:$0xf0] }
 0x3e1   :  { %v1137_v54 = vpop.f32.mrf.mxu3 }
 0x3e2   :  { %v1141_v47 = vpack.c.bf16 %v1137_v54, %v1137_v54 }
 0x3e4   :  { %v2916_v59 = vunpack.c.l.b16 %v1141_v47  ;;  %v2026_v47 = vor.u32 %v2269_v12, %v2025_v16  ;;  %v2293_v16 = vld [vmem:[#allocation2 + $0x12c] sm:$0xf0]  ;;  %v2291_v12 = vld [vmem:[#allocation2 + $0x114] sm:$0xf] }
 0x3e6   :  { %v1243_v63 = vpack.c.b16 %v2916_v59, %v2914_v51  ;;  %1324 = vmatpush.bf16.msrb.mxu1 %v2026_v47  ;;  %v2391_v51 = vld [vmem:[%s2990_s0 + $0x8] sm:$0xff]  ;;  %v2115_v47 = vld [vmem:[#allocation2 + $0x130] sm:$0xf0] }
 0x3e9   :  { %v1161_v1 = vpop.f32.mrf.mxu3 }
 0x3ea   :  { %v1166_v55 = vsel %vm1033_vm4, %v1161_v1, -inf  ;;  %v2021_v1 = vld [vmem:[#allocation2 + $0x4c] sm:$0xf] }
 0x3eb   :  { %v1168_v57 = vsel %vm1067_vm5, %v1166_v55, -inf }
 0x3ec   :  { %1169 = vmax.xlane.f32.xlu1 %v1168_v57 }
 0x3f1   :  { %v1163_v60 = vpop.f32.mrf.mxu3 }
 0x3f2   :  { %v1167_v10 = vsel %vm1034_vm6, %v1163_v60, -inf }
 0x3f3   :  { %v1171_v48 = vsel %vm1067_vm5, %v1167_v10, -inf }
 0x3f4   :  { %1172 = vmax.xlane.f32.xlu1 %v1171_v48  ;;  %v2267_v48 = vld [vmem:[#allocation2 + $0x28] sm:$0xf0] }
 0x45f   :  { %v1170_v34 = vpop.xlane.xlu1 %1169 }
 0x460   :  { %v1174_v61 = vsub.f32 %v1166_v55, %v1170_v34  ;;  %v2268_v55 = vld [vmem:[#allocation2 + $0x68] sm:$0xf0] }
 0x461   :  { %v2022_v57 = vor.u32 %v2268_v55, %v2021_v1  ;;  %v2121_v1 = vld [vmem:[#allocation2 + $0x118] sm:$0xf] }
 0x462   :  { %v1176_v23 = vmul.f32 1.442695, %v1174_v61  ;;  %v2294_v55 = vld [vmem:[#allocation2 + $0x134] sm:$0xf0] }
 0x463   :  { %1325 = vmatpush.bf16.msrb.mxu1 %v2022_v57  ;;  %v2118_v57 = vor.u32 %v2291_v12, %v2115_v47 }
 0x464   :  { %2362 = vpow2.f32 %v1176_v23 }
 0x467   :  { %v1173_v3 = vpop.xlane.xlu1 %1172 }
 0x468   :  { %v1175_v6 = vsub.f32 %v1167_v10, %v1173_v3  ;;  %v2017_v10 = vld [vmem:[#allocation2 + $0xc] sm:$0xf] }
 0x469   :  { %v2018_v23 = vor.u32 %v2267_v48, %v2017_v10  ;;  %v2292_v10 = vld [vmem:[#allocation2 + $0x11c] sm:$0xf] }
 0x46a   :  { %v2363_v58 = vpop.eup %2362  ;;  %v1178_v26 = vmul.f32 1.442695, %v1175_v6  ;;  %v2123_v48 = vld [vmem:[#allocation2 + $0x138] sm:$0xf0] }
 0x46b   :  { %v1180_v8 = vsel %vm1067_vm5, %v2363_v58, 0.0  ;;  %1326 = vmatpush.bf16.msrb.mxu1 %v2018_v23  ;;  %v2289_v23 = vld [vmem:[#allocation2 + $0xec] sm:$0xf0] }
 0x46c   :  { %2364 = vpow2.f32 %v1178_v26  ;;  %1181 = vadd.xlane.f32.xlu0 %v1180_v8 }
 0x472   :  { %v2365_v9 = vpop.eup %2364 }
 0x473   :  { %v1183_v11 = vsel %vm1067_vm5, %v2365_v9, 0.0 }
 0x474   :  { %1184 = vadd.xlane.f32.xlu1 %v1183_v11  ;;  %v2390_v11 = vld [vmem:[%s2990_s0] sm:$0xff]  ;;  %s2536_s0 = smov [#allocation9]  }
 0x475   :  { %s1882_s25 = sshll.u32 %s2536_s0, 4  ;;  %s1883_s25 = int_to_ptr.vmem [resolvable:$true] %s1882_s25 }
 0x4df   :  { %v1182_v36 = vpop.xlane.xlu0 %1181 }
 0x4e0   :  { %2366 = vrcp.f32 %v1182_v36  ;;  %v1197_v29 = vand.u32 2147483648, %v1182_v36  ;;  %vm1191_vm1 = vweird.f32 %v1182_v36  ;;  %v1195_v24 = vand.u32 2147483647, %v1182_v36 }
 0x4e2   :  { %v1198_v19 = vor.u32 1.1754944e-38, %v1197_v29  ;;  %vm1196_vm4 = vcmp.eq.f32.partialorder %v1195_v24, 8.507059e+37  ;;  %v2306_v29 = vld [vmem:[#allocation2 + $0x1f4] sm:$0xf0] }
 0x4e6   :  { %v2367_v44 = vpop.eup %2366 }
 0x4e7   :  { %v1187_v2 = vmul.f32 %v2367_v44, %v1182_v36  ;;  %v1185_v13 = vpop.xlane.xlu1 %1184  ;;  %vm1192_vm0 = vweird.f32 %v2367_v44 }
 0x4e8   :  { %2368 = vrcp.f32 %v1185_v13  ;;  %vm1193_vm2 = vmor %vm1191_vm1, %vm1192_vm0  ;;  %v1212_v35 = vand.u32 2147483648, %v1185_v13  ;;  %v1210_v37 = vand.u32 2147483647, %v1185_v13  ;;  %vm1206_vm6 = vweird.f32 %v1185_v13 }
 0x4e9   :  { %v1188_v14 = vsub.f32 1.0, %v1187_v2 }
 0x4ea   :  { %v1213_v45 = vor.u32 1.1754944e-38, %v1212_v35  ;;  %vm1211_vm8 = vcmp.eq.f32.partialorder %v1210_v37, 8.507059e+37  ;;  %v2304_v35 = vld [vmem:[#allocation2 + $0x1dc] sm:$0xf]  ;;  %v2145_v37 = vld [vmem:[#allocation2 + $0x190] sm:$0xf] }
 0x4eb   :  { %v1189_v18 = vmul.f32 %v2367_v44, %v1188_v14  ;;  %v2305_v14 = vld [vmem:[#allocation2 + $0x1ec] sm:$0xf0] }
 0x4ed   :  { %v1190_v22 = vadd.f32 %v2367_v44, %v1189_v18  ;;  %v2303_v18 = vld [vmem:[#allocation2 + $0x1d4] sm:$0xf] }
 0x4ee   :  { %v2369_v20 = vpop.eup %2368 }
 0x4ef   :  { %v1202_v25 = vmul.f32 %v2369_v20, %v1185_v13  ;;  %v1194_v21 = vsel %vm1193_vm2, %v2367_v44, %v1190_v22  ;;  %vm1207_vm3 = vweird.f32 %v2369_v20  ;;  %v2161_v13 = vld [vmem:[#allocation2 + $0x1d0] sm:$0xf]  ;;  %v2163_v22 = vld [vmem:[#allocation2 + $0x1f0] sm:$0xf0] }
 0x4f0   :  { %v1199_v42 = vsel %vm1196_vm4, %v1198_v19, %v1194_v21  ;;  %vm1208_vm7 = vmor %vm1206_vm6, %vm1207_vm3  ;;  %v2166_v24 = vor.u32 %v2303_v18, %v2163_v22  ;;  %v2171_v21 = vld [vmem:[#allocation2 + $0x1f8] sm:$0xf0]  ;;  %v2301_v19 = vld [vmem:[#allocation2 + $0x1ac] sm:$0xf0] }
 0x4f1   :  { %v1203_v53 = vsub.f32 1.0, %v1202_v25  ;;  %v1200_v5 = vmul.f32 %v2363_v58, %v1199_v42  ;;  %v2169_v25 = vld [vmem:[#allocation2 + $0x1d8] sm:$0xf]  ;;  %v2146_v42 = vor.u32 %v2301_v19, %v2145_v37  ;;  %v2281_v37 = vld [vmem:[#allocation2 + $0x6c] sm:$0xf0] }
 0x4f2   :  { %1579 = vmatpush.bf16.msra.mxu3 %v2166_v24  ;;  %v2089_v22 = vld [vmem:[#allocation2 + $0x98] sm:$0xf]  ;;  %v2279_v19 = vld [vmem:[#allocation2 + $0x54] sm:$0xf] }
 0x4f3   :  { %v1204_v31 = vmul.f32 %v2369_v20, %v1203_v53  ;;  %v2170_v53 = vor.u32 %v2306_v29, %v2169_v25  ;;  %v2286_v25 = vld [vmem:[#allocation2 + $0xb4] sm:$0xf0] }
 0x4f4   :  { %v2090_v24 = vor.u32 %v2286_v25, %v2089_v22  ;;  %v2319_v22 = vld [vmem:[#allocation5 + $0x60] sm:$0xff]  ;;  %v2310_v25 = vld [vmem:[#allocation5 + $0x18] sm:$0xff] }
 0x4f5   :  { %v1205_v40 = vadd.f32 %v2369_v20, %v1204_v31  ;;  %v2174_v31 = vor.u32 %v2304_v35, %v2171_v21  ;;  %1593 = vmatpush.bf16.msrb.mxu0 %v2170_v53  ;;  %v2284_v53 = vld [vmem:[#allocation2 + $0x9c] sm:$0xf] }
 0x4f6   :  { %v2091_v35 = vld [vmem:[#allocation2 + $0xb8] sm:$0xf0] }
 0x4f7   :  { %v1209_v46 = vsel %vm1208_vm7, %v2369_v20, %v1205_v40  ;;  %v2162_v20 = vor.u32 %v2305_v14, %v2161_v13  ;;  %v2299_v40 = vld [vmem:[#allocation2 + $0x194] sm:$0xf]  ;;  %1607 = vmatpush.bf16.msra.mxu1 %v2174_v31  ;;  %v2285_v13 = vld [vmem:[#allocation2 + $0xac] sm:$0xf0]  ;;  %v2094_v21 = vor.u32 %v2284_v53, %v2091_v35 }
 0x4f8   :  { %v1214_v0 = vsel %vm1211_vm8, %v1213_v45, %v1209_v46  ;;  %v2147_v45 = vld [vmem:[#allocation2 + $0x1b0] sm:$0xf0]  ;;  %v2153_v46 = vld [vmem:[#allocation2 + $0x198] sm:$0xf]  ;;  %v2065_v31 = vld [vmem:[#allocation2 + $0x50] sm:$0xf] }
 0x4f9   :  { %v1215_v33 = vmul.f32 %v2365_v9, %v1214_v0  ;;  %1565 = vmatpush.bf16.msrb.mxu2 %v2162_v20  ;;  %v2302_v0 = vld [vmem:[#allocation2 + $0x1b4] sm:$0xf0]  ;;  %v2283_v14 = vld [vmem:[#allocation2 + $0x94] sm:$0xf] }
 0x4fa   :  { %v2083_v20 = vld [vmem:[#allocation2 + $0xb0] sm:$0xf0] }
 0x4fb   :  { %v1216_v56 = vpack.c.bf16 %v1215_v33, %v1200_v5  ;;  %v2150_v5 = vor.u32 %v2299_v40, %v2147_v45  ;;  %v2154_v33 = vor.u32 %v2302_v0, %v2153_v46  ;;  %v2086_v29 = vor.u32 %v2283_v14, %v2083_v20  ;;  %v2073_v45 = vld [vmem:[#allocation2 + $0x58] sm:$0xf]  ;;  %v2313_v14 = vld [vmem:[#allocation5 + $0x30] sm:$0xff]  ;;  %v2320_v20 = vld [vmem:[#allocation5 + $0x68] sm:$0xff] }
 0x4fc   :  { %v2066_v40 = vor.u32 %v2281_v37, %v2065_v31  ;;  %v2282_v46 = vld [vmem:[#allocation2 + $0x74] sm:$0xf0]  ;;  %v2309_v31 = vld [vmem:[#allocation5 + $0x10] sm:$0xff] }
 0x4fd   :  { %2014 = vmatmul.msk.bf16.vlgmr.msra.gmra.mxu0 %vm1067_vm5, %v1216_v56  ;;  %v2300_v56 = vld [vmem:[#allocation2 + $0x19c] sm:$0xf]  ;;  %1566 = vmatpush.bf16.msrb.mxu2 %v2146_v42  ;;  %v2067_v42 = vld [vmem:[#allocation2 + $0x70] sm:$0xf0] }
 0x4fe   :  { %v2158_v62 = vor.u32 %v2300_v56, %v2155_v28  ;;  %1580 = vmatpush.bf16.msra.mxu3 %v2150_v5  ;;  %1594 = vmatpush.bf16.msrb.mxu0 %v2154_v33  ;;  %v2070_v0 = vor.u32 %v2279_v19, %v2067_v42  ;;  %v2074_v5 = vor.u32 %v2282_v46, %v2073_v45  ;;  %v2280_v33 = vld [vmem:[#allocation2 + $0x5c] sm:$0xf]  ;;  %v2317_v37 = vld [vmem:[#allocation5 + $0x50] sm:$0xff]  ;;  %v2308_v19 = vld [vmem:[#allocation5 + $0x8] sm:$0xff] }
 0x4ff   :  { %v2075_v56 = vld [vmem:[#allocation2 + $0x78] sm:$0xf0] }
 0x500   :  { %1608 = vmatpush.bf16.msra.mxu1 %v2158_v62  ;;  %v2078_v28 = vor.u32 %v2280_v33, %v2075_v56  ;;  %v2049_v62 = vld [vmem:[#allocation2 + $0x10] sm:$0xf] }
 0x501   :  { %1567 = vmatpush.bf16.msrb.mxu2 %v2130_v49  ;;  %v2050_v49 = vor.u32 %v2277_v38, %v2049_v62  ;;  %v2315_v62 = vld [vmem:[#allocation5 + $0x40] sm:$0xff] }
 0x502   :  { %1581 = vmatpush.bf16.msra.mxu3 %v2134_v32  ;;  %1595 = vmatpush.bf16.msrb.mxu0 %v2138_v4  ;;  %v2054_v4 = vor.u32 %v2275_v39, %v2051_v50 }
 0x504   :  { %1609 = vmatpush.bf16.msra.mxu1 %v2142_v27  ;;  %v2059_v27 = vld [vmem:[#allocation2 + $0x38] sm:$0xf0] }
 0x506   :  { %1582 = vmatpush.bf16.msra.mxu3 %v2118_v57 }
 0x57a   :  { %v1232_v54 = vpop.f32.mrf.mxu0 }
 0x57b   :  { %v1237_v60 = vpack.c.bf16 %v1232_v54, %v1232_v54  ;;  %v2114_v54 = vor.u32 %v2293_v16, %v2113_v7  ;;  %v2062_v7 = vor.u32 %v2276_v17, %v2059_v27 }
 0x57d   :  { %v1246_v3 = vunpack.c.l.b16 %v1237_v60  ;;  %v2122_v60 = vor.u32 %v2294_v55, %v2121_v1  ;;  %1568 = vmatpush.bf16.msrb.mxu2 %v2114_v54 }
 0x57f   :  { %1596 = vmatpush.bf16.msrb.mxu0 %v2122_v60 }
 0x582   :  { %v1234_v34 = vpop.f32.mrf.mxu0 }
 0x583   :  { %v1238_v61 = vpack.c.bf16 %v1234_v34, %v1234_v34  ;;  %v2126_v34 = vor.u32 %v2292_v10, %v2123_v48 }
 0x585   :  { %v1247_v6 = vunpack.c.l.b16 %v1238_v61  ;;  %v2097_v61 = vld [vmem:[#allocation2 + $0xd0] sm:$0xf]  ;;  %1610 = vmatpush.bf16.msra.mxu1 %v2126_v34 }
 0x587   :  { %v1248_v58 = vpack.c.b16 %v1247_v6, %v1246_v3  ;;  %v2287_v3 = vld [vmem:[#allocation2 + $0xd4] sm:$0xf]  ;;  %v2098_v6 = vor.u32 %v2289_v23, %v2097_v61 }
 0x589   :  { %1249 = vrot.lane.b32.xlu1 %v1248_v58, %s2521_s29  ;;  %v2099_v58 = vld [vmem:[#allocation2 + $0xf0] sm:$0xf0]  ;;  %1569 = vmatpush.bf16.msrb.mxu2 %v2098_v6  ;;  %s2537_s29 = smov 128  }
 0x5fb   :  { %v1250_v26 = vpop.permute.xlu1 %1249 }
 0x5fc   :  { %v1253_v8 = vsel %vm984_vm10, %v1243_v63, %v1250_v26  ;;  %v2105_v26 = vld [vmem:[#allocation2 + $0xd8] sm:$0xf] }
 0x5fd   :  { %1327 = vmatmul.bf16.vlgmr.msrb.gmra.mxu1 %v1253_v8  ;;  %v2290_v8 = vld [vmem:[#allocation2 + $0xf4] sm:$0xf0] }
 0x67a   :  { %v1328_v9 = vpop.f32.mrf.mxu1 }
 0x67b   :  { %v2939_v36 = vadd.f32 %v2390_v11, %v1328_v9  ;;  %v2102_v9 = vor.u32 %v2287_v3, %v2099_v58  ;;  %v2106_v11 = vor.u32 %v2290_v8, %v2105_v26  ;;  %v2347_v8 = vld [vmem:[#allocation7 + $0x1] ss:$0 sm:$0xff] }
 0x67d   :  { %1333 = vst [vmem:[#allocation9] sm:$0xff] %v2939_v36  ;;  %v1335_v44 = vmul.f32 %v2939_v36, %v2939_v36  ;;  %1583 = vmatpush.bf16.msra.mxu3 %v2102_v9  ;;  %1597 = vmatpush.bf16.msrb.mxu0 %v2106_v11 }
 0x67f   :  { %1337 = vadd.xlane.f32.xlu2 %v1335_v44  ;;  %v2288_v44 = vld [vmem:[#allocation2 + $0xdc] sm:$0xf] }
 0x681   :  { %1584 = vmatpush.bf16.msra.mxu3 %v2086_v29  ;;  %1598 = vmatpush.bf16.msrb.mxu0 %v2090_v24  ;;  %v2318_v29 = vld [vmem:[#allocation5 + $0x58] sm:$0xff] }
 0x682   :  { %v1330_v2 = vpop.f32.mrf.mxu1 }
 0x683   :  { %v2947_v59 = vadd.f32 %v2391_v51, %v1330_v2  ;;  %v2107_v2 = vld [vmem:[#allocation2 + $0xf8] sm:$0xf0] }
 0x684   :  { %v2110_v51 = vor.u32 %v2288_v44, %v2107_v2 }
 0x685   :  { %1334 = vst [vmem:[#allocation9 + $0x8] sm:$0xff] %v2947_v59  ;;  %v1336_v63 = vmul.f32 %v2947_v59, %v2947_v59  ;;  %1585 = vmatpush.bf16.msra.mxu3 %v2070_v0  ;;  %1599 = vmatpush.bf16.msrb.mxu0 %v2074_v5 }
 0x686   :  { %1611 = vmatpush.bf16.msra.mxu1 %v2110_v51  ;;  %1890 = dma.vmem_to_hbm [thread:$0]  %s1883_s25, 256, %s1885_s28, [#allocation10], %s2537_s29, %s2537_s29, %s2538_s30  }
 0x687   :  { %1339 = vadd.xlane.f32.xlu1 %v1336_v63  ;;  %v2081_v63 = vld [vmem:[#allocation2 + $0x90] sm:$0xf] }
 0x688   :  { %v2082_v18 = vor.u32 %v2285_v13, %v2081_v63  ;;  %v2314_v63 = vld [vmem:[#allocation5 + $0x38] sm:$0xff] }
 0x689   :  { %1586 = vmatpush.bf16.msra.mxu3 %v2054_v4  ;;  %1600 = vmatpush.bf16.msrb.mxu0 %v2058_v43  ;;  %v2322_v13 = vld [vmem:[#allocation5 + $0x78] sm:$0xff] }
 0x68a   :  { %1570 = vmatpush.bf16.msrb.mxu2 %v2082_v18  ;;  %1612 = vmatpush.bf16.msra.mxu1 %v2094_v21  ;;  %v2321_v18 = vld [vmem:[#allocation5 + $0x70] sm:$0xff] }
 0x68d   :  { %1849 = vmatpush.bf16.msrb.mxu3 %v2322_v13 }
 0x68e   :  { %1571 = vmatpush.bf16.msrb.mxu2 %v2066_v40  ;;  %1613 = vmatpush.bf16.msra.mxu1 %v2078_v28  ;;  %v2316_v40 = vld [vmem:[#allocation5 + $0x48] sm:$0xff]  ;;  %v2307_v28 = vld [vmem:[#allocation5] sm:$0xff] }
 0x691   :  { %1850 = vmatpush.bf16.msrb.mxu3 %v2321_v18 }
 0x692   :  { %1572 = vmatpush.bf16.msrb.mxu2 %v2050_v49  ;;  %1614 = vmatpush.bf16.msra.mxu1 %v2062_v7 }
 0x695   :  { %1851 = vmatpush.bf16.msrb.mxu3 %v2320_v20 }
 0x696   :  { %1835 = vmatpush.bf16.msra.mxu2 %v2314_v63 }
 0x699   :  { %1852 = vmatpush.bf16.msrb.mxu3 %v2319_v22 }
 0x69a   :  { %1836 = vmatpush.bf16.msra.mxu2 %v2313_v14 }
 0x69d   :  { %1853 = vmatpush.bf16.msrb.mxu3 %v2318_v29 }
 0x6a1   :  { %1854 = vmatpush.bf16.msrb.mxu3 %v2317_v37 }
 0x6a5   :  { %1855 = vmatpush.bf16.msrb.mxu3 %v2316_v40 }
 0x6a9   :  { %1856 = vmatpush.bf16.msrb.mxu3 %v2315_v62 }
 0x6f2   :  { %v1338_v41 = vpop.xlane.xlu2 %1337 }
 0x6f3   :  { %v1341_v32 = vmul.f32 %v1338_v41, %v2616_v15 }
 0x6f5   :  { %v1343_v16 = vadd.f32 1e-06, %v1341_v32 }
 0x6f7   :  { %2370 = vrsqrt.f32 %v1343_v16  ;;  %vm1351_vm5 = vweird.f32 %v1343_v16 }
 0x6fa   :  { %v1340_v12 = vpop.xlane.xlu1 %1339 }
 0x6fb   :  { %v1342_v54 = vmul.f32 %v1340_v12, %v2616_v15 }
 0x6fd   :  { %v2371_v47 = vpop.eup %2370  ;;  %v1344_v1 = vadd.f32 1e-06, %v1342_v54 }
 0x6fe   :  { %v1346_v55 = vmul.f32 %v2371_v47, %v1343_v16  ;;  %vm1352_vm10 = vweird.f32 %v2371_v47 }
 0x6ff   :  { %2372 = vrsqrt.f32 %v1344_v1  ;;  %vm1353_vm9 = vmor %vm1351_vm5, %vm1352_vm10  ;;  %vm1361_vm12 = vweird.f32 %v1344_v1 }
 0x700   :  { %v1347_v57 = vmul.f32 %v2371_v47, %v1346_v55 }
 0x702   :  { %v1348_v60 = vmul.f32 0.5, %v1347_v57 }
 0x704   :  { %v1349_v10 = vsub.f32 1.5, %v1348_v60 }
 0x705   :  { %v2373_v48 = vpop.eup %2372 }
 0x706   :  { %v1356_v34 = vmul.f32 %v2373_v48, %v1344_v1  ;;  %v1350_v61 = vmul.f32 %v2371_v47, %v1349_v10  ;;  %vm1362_vm11 = vweird.f32 %v2373_v48 }
 0x707   :  { %vm1363_vm13 = vmor %vm1361_vm12, %vm1362_vm11 }
 0x708   :  { %v1357_v23 = vmul.f32 %v2373_v48, %v1356_v34  ;;  %v1354_v6 = vsel %vm1353_vm9, %v2371_v47, %v1350_v61 }
 0x709   :  { %v1365_v15 = vmul.f32 %v1354_v6, %v2939_v36  ;;  %v2312_v36 = vld [vmem:[#allocation5 + $0x28] sm:$0xff] }
 0x70a   :  { %v1358_v3 = vmul.f32 0.5, %v1357_v23  ;;  %1837 = vmatpush.bf16.msra.mxu2 %v2312_v36 }
 0x70b   :  { %v1370_v44 = vmul.f32 %v2347_v8, %v1365_v15 }
 0x70c   :  { %v1359_v58 = vsub.f32 1.5, %v1358_v3 }
 0x70e   :  { %v1360_v26 = vmul.f32 %v2373_v48, %v1359_v58 }
 0x710   :  { %v1364_v9 = vsel %vm1363_vm13, %v2373_v48, %v1360_v26 }
 0x711   :  { %v1366_v11 = vmul.f32 %v1364_v9, %v2947_v59  ;;  %v2311_v59 = vld [vmem:[#allocation5 + $0x20] sm:$0xff] }
 0x712   :  { %1838 = vmatpush.bf16.msra.mxu2 %v2311_v59 }
 0x713   :  { %v1371_v2 = vmul.f32 %v2347_v8, %v1366_v11 }
 0x715   :  { %v1372_v51 = vpack.c.bf16 %v1371_v2, %v1370_v44 }
 0x716   :  { %1839 = vmatpush.bf16.msra.mxu2 %v2310_v25 }
 0x717   :  { %1573 = vmatmul.bf16.vlgmr.msrb.gmra.mxu2 %v1372_v51  ;;  %1587 = vmatmul.bf16.vlgmr.msra.gmra.mxu3 %v1372_v51 }
 0x718   :  { %1601 = vmatmul.bf16.vlgmr.msrb.gmra.mxu0 %v1372_v51  ;;  %1615 = vmatmul.bf16.vlgmr.msra.gmra.mxu1 %v1372_v51 }
 0x71a   :  { %1840 = vmatpush.bf16.msra.mxu2 %v2309_v31 }
 0x71e   :  { %1841 = vmatpush.bf16.msra.mxu2 %v2308_v19 }
 0x722   :  { %1842 = vmatpush.bf16.msra.mxu2 %v2307_v28 }
 0x795   :  { %v1602_v55 = vpop.f32.mrf.mxu0  ;;  %v1616_v26 = vpop.f32.mrf.mxu1 }
 0x79a   :  { %v2956_v24 = vpop.f32.mrf.mxu2  ;;  %v2958_v53 = vpop.f32.mrf.mxu3 }
 0x79b   :  { %v2175_v35 = vmul.f32 -1.442695, %v2956_v24  ;;  %v2176_v21 = vmul.f32 -1.442695, %v2958_v53 }
 0x79d   :  { %2374 = vpow2.f32 %v2175_v35  ;;  %v1604_v37 = vpop.f32.mrf.mxu0 }
 0x79e   :  { %2376 = vpow2.f32 %v2176_v21 }
 0x7a2   :  { %v2962_v42 = vpop.f32.mrf.mxu2  ;;  %v2964_v45 = vpop.f32.mrf.mxu3 }
 0x7a3   :  { %v2375_v46 = vpop.eup %2374  ;;  %v2177_v0 = vmul.f32 -1.442695, %v2962_v42  ;;  %v2178_v56 = vmul.f32 -1.442695, %v2964_v45 }
 0x7a4   :  { %v2377_v5 = vpop.eup %2376  ;;  %v1633_v33 = vadd.f32 1.0, %v2375_v46 }
 0x7a5   :  { %v1634_v38 = vadd.f32 1.0, %v2377_v5  ;;  %2378 = vpow2.f32 %v2177_v0  ;;  %v1618_v5 = vpop.f32.mrf.mxu1 }
 0x7a6   :  { %2380 = vrcp.f32 %v1633_v33  ;;  %v1648_v54 = vand.u32 2147483648, %v1633_v33  ;;  %vm1642_vm15 = vweird.f32 %v1633_v33  ;;  %v1646_v47 = vand.u32 2147483647, %v1633_v33 }
 0x7a7   :  { %2382 = vrcp.f32 %v1634_v38  ;;  %v1661_v10 = vand.u32 2147483647, %v1634_v38  ;;  %v1663_v61 = vand.u32 2147483648, %v1634_v38  ;;  %vm1657_vm2 = vweird.f32 %v1634_v38 }
 0x7a8   :  { %2384 = vpow2.f32 %v2178_v56  ;;  %v1649_v3 = vor.u32 1.1754944e-38, %v1648_v54  ;;  %vm1647_vm3 = vcmp.eq.f32.partialorder %v1646_v47, 8.507059e+37 }
 0x7a9   :  { %vm1662_vm7 = vcmp.eq.f32.partialorder %v1661_v10, 8.507059e+37  ;;  %v1664_v51 = vor.u32 1.1754944e-38, %v1663_v61 }
 0x7ab   :  { %v2379_v39 = vpop.eup %2378 }
 0x7ac   :  { %v2381_v41 = vpop.eup %2380  ;;  %v1635_v49 = vadd.f32 1.0, %v2379_v39 }
 0x7ad   :  { %v2383_v50 = vpop.eup %2382  ;;  %v1638_v52 = vmul.f32 %v2381_v41, %v1633_v33  ;;  %vm1643_vm14 = vweird.f32 %v2381_v41 }
 0x7ae   :  { %v2385_v30 = vpop.eup %2384  ;;  %v1653_v32 = vmul.f32 %v2383_v50, %v1634_v38  ;;  %2386 = vrcp.f32 %v1635_v49  ;;  %vm2968_vm0 = vmor %vm1642_vm15, %vm1643_vm14  ;;  %vm1658_vm1 = vweird.f32 %v2383_v50  ;;  %v1678_v6 = vand.u32 2147483648, %v1635_v49 }
 0x7af   :  { %v1639_v4 = vsub.f32 1.0, %v1638_v52  ;;  %v1636_v43 = vadd.f32 1.0, %v2385_v30  ;;  %vm2974_vm4 = vmor %vm1657_vm2, %vm1658_vm1  ;;  %v1676_v9 = vand.u32 2147483647, %v1635_v49  ;;  %vm1672_vm8 = vweird.f32 %v1635_v49 }
 0x7b0   :  { %v1654_v17 = vsub.f32 1.0, %v1653_v32  ;;  %v1679_v14 = vor.u32 1.1754944e-38, %v1678_v6 }
 0x7b1   :  { %v1640_v27 = vmul.f32 %v2381_v41, %v1639_v4  ;;  %2388 = vrcp.f32 %v1636_v43  ;;  %v1693_v13 = vand.u32 2147483648, %v1636_v43  ;;  %v1691_v36 = vand.u32 2147483647, %v1636_v43 }
 0x7b2   :  { %v1655_v7 = vmul.f32 %v2383_v50, %v1654_v17  ;;  %vm1677_vm9 = vcmp.eq.f32.partialorder %v1676_v9, 8.507059e+37  ;;  %vm1687_vm11 = vweird.f32 %v1636_v43 }
 0x7b3   :  { %v1641_v16 = vadd.f32 %v2381_v41, %v1640_v27  ;;  %v1694_v21 = vor.u32 1.1754944e-38, %v1693_v13  ;;  %vm1692_vm13 = vcmp.eq.f32.partialorder %v1691_v36, 8.507059e+37 }
 0x7b4   :  { %v2387_v12 = vpop.eup %2386  ;;  %v1656_v60 = vadd.f32 %v2383_v50, %v1655_v7 }
 0x7b5   :  { %v1668_v1 = vmul.f32 %v2387_v12, %v1635_v49  ;;  %v1645_v34 = vsel %vm2968_vm0, %v2381_v41, %v1641_v16  ;;  %vm1673_vm6 = vweird.f32 %v2387_v12 }
 0x7b6   :  { %v1650_v11 = vsel %vm1647_vm3, %v1649_v3, %v1645_v34  ;;  %v1660_v44 = vsel %vm2974_vm4, %v2383_v50, %v1656_v60  ;;  %vm1674_vm10 = vmor %vm1672_vm8, %vm1673_vm6 }
 0x7b7   :  { %v2389_v48 = vpop.eup %2388  ;;  %v1669_v23 = vsub.f32 1.0, %v1668_v1  ;;  %v1697_v20 = vmul.f32 %v1650_v11, %v2956_v24  ;;  %v1665_v59 = vsel %vm1662_vm7, %v1664_v51, %v1660_v44 }
 0x7b8   :  { %v1683_v58 = vmul.f32 %v2389_v48, %v1636_v43  ;;  %vm1688_vm5 = vweird.f32 %v2389_v48  ;;  %v1698_v31 = vmul.f32 %v1665_v59, %v2958_v53 }
 0x7b9   :  { %v1670_v8 = vmul.f32 %v2387_v12, %v1669_v23  ;;  %vm1689_vm12 = vmor %vm1687_vm11, %vm1688_vm5  ;;  %v1701_v40 = vmul.f32 %v1697_v20, %v1602_v55 }
 0x7ba   :  { %v1684_v2 = vsub.f32 1.0, %v1683_v58  ;;  %v1702_v56 = vmul.f32 %v1698_v31, %v1616_v26 }
 0x7bb   :  { %v1671_v63 = vadd.f32 %v2387_v12, %v1670_v8 }
 0x7bc   :  { %v1685_v18 = vmul.f32 %v2389_v48, %v1684_v2 }
 0x7bd   :  { %v1675_v22 = vsel %vm1674_vm10, %v2387_v12, %v1671_v63 }
 0x7be   :  { %v1680_v25 = vsel %vm1677_vm9, %v1679_v14, %v1675_v22  ;;  %v1686_v29 = vadd.f32 %v2389_v48, %v1685_v18 }
 0x7bf   :  { %v1699_v35 = vmul.f32 %v1680_v25, %v2962_v42 }
 0x7c0   :  { %v1690_v19 = vsel %vm1689_vm12, %v2389_v48, %v1686_v29 }
 0x7c1   :  { %v1703_v46 = vmul.f32 %v1699_v35, %v1604_v37  ;;  %v1695_v0 = vsel %vm1692_vm13, %v1694_v21, %v1690_v19 }
 0x7c2   :  { %v1700_v24 = vmul.f32 %v1695_v0, %v2964_v45 }
 0x7c3   :  { %v1705_v33 = vpack.c.bf16 %v1703_v46, %v1701_v40 }
 0x7c4   :  { %v1704_v28 = vmul.f32 %v1700_v24, %v1618_v5 }
 0x7c5   :  { %1843 = vmatmul.bf16.vlgmr.msra.gmra.mxu2 %v1705_v33 }
 0x7c6   :  { %v1706_v62 = vpack.c.bf16 %v1704_v28, %v1702_v56 }
 0x7c8   :  { %1857 = vmatmul.bf16.vlgmr.msrb.gmra.mxu3 %v1706_v62 }
 0x848   :  { %v1844_v53 = vpop.f32.mrf.mxu2 }
 0x84b   :  { %v1858_v42 = vpop.f32.mrf.mxu3 }
 0x84c   :  { %v1859_v45 = vadd.f32 %v1858_v42, %v1844_v53 }
 0x84e   :  { %1863 = vst [vmem:[#allocation8] sm:$0xff] %v1859_v45 }
 0x850   :  { %v1846_v38 = vpop.f32.mrf.mxu2 }
 0x853   :  { %v1860_v39 = vpop.f32.mrf.mxu3 }
 0x854   :  { %v1861_v41 = vadd.f32 %v1860_v39, %v1846_v38 }
 0x856   :  { %1864 = vst [vmem:[#allocation8 + $0x8] sm:$0xff] %v1861_v41 }
 0x857   :  { %1877 = dma.vmem_to_hbm [thread:$0]  %s1870_s8, 256, %s1872_s10, [#allocation4], %s2537_s29, %s2537_s29, %s2538_s30  }
 0x858   :  { %2516 = dma.done.wait [#allocation4], 256  }
 0x859   :  { %2517 = vsyncadd [#allocation4], 4294967040 }
 0x85a   :  { %2518 = dma.done.wait [#allocation10], 256  }
 0x85b   :  { %2519 = vsyncadd [#allocation10], 4294967040 }
 0x85c   :  { %1899 = vsyncpa [#allocation3], 1 }
 0x85d   :  { %1900 = vsyncpa [#allocation6], 1 }
 0x85e   :  { %1901 = vsyncpa [#allocation4], 1 }
 0x85f   :  { %1902 = vsyncpa [#allocation10], 1 }

</bundles_post_ra>
